<compile_context>
chip_gen: v7x
topology: tpu7x:2x2x1
jax: 0.10.0
libtpu: 0.0.40
codegen_flags: <defaults>
</compile_context>

<pallas_src>
import functools

import numpy as np

import jax
import jax.numpy as jnp
from jax.experimental import pallas as pl
from jax.experimental.pallas import tpu as pltpu

LANE = 128  # lane width / MXU native tile (pad all feature dims to this)


def _round_up(v, m):
    return (v + m - 1) // m * m


def choose_tile(n):
    """Largest tile in {512, 256, 128} that keeps >= 2 row blocks (so the
    'parallel' row axis can be sharded across v7x's two TensorCores) without
    blowing up the padded node count for small graphs.  TILE_M == TILE_K."""
    for tile in (512, 256, 128):
        n_pad = _round_up(n, tile)
        if n_pad // tile >= 2:
            return tile, n_pad
    return 128, _round_up(n, 128)


# ----------------------------- Pallas kernel ------------------------------ #
def sageconv_kernel(kblk_ids_ref, kblk_cnt_ref,          # scalar-prefetch (SMEM)
                    a_ref, xk_ref, xi_ref, invdeg_ref,   # inputs (VMEM tiles)
                    wl_ref, wr_ref, b_ref,
                    o_ref, acc_ref, *, apply_relu):
    """One SAGEConv layer, block-sparse tiled.

    kblk_ids_ref : [nmt, kmax]  int32  nonzero column-block ids per row tile
    kblk_cnt_ref : [nmt]        int32  number of valid entries per row tile
    a_ref   : [TILE, TILE]   bf16 adjacency-counts tile (un-normalized)
    xk_ref  : [TILE, Fin_p]  bf16 neighbor-row features (gathered k block)
    xi_ref  : [TILE, Fin_p]  bf16 self-row features (root branch)
    invdeg_ref : [TILE, 1]   f32  exact 1/in-degree for this row tile
    wl_ref  : [Fin_p, Fout_p] bf16 neighbor-branch weight
    wr_ref  : [Fin_p, Fout_p] bf16 root-branch weight
    b_ref   : [1, Fout_p]    f32  bias (neighbor branch, zero-padded)
    o_ref   : [TILE, Fout_p] output tile (bf16 hidden / f32 final)
    acc_ref : [TILE, Fin_p]  f32 VMEM accumulator for A_counts @ X
    """
    i = pl.program_id(0)
    k = pl.program_id(1)

    @pl.when(k == 0)
    def _():
        acc_ref[...] = jnp.zeros_like(acc_ref)

    # Accumulate only over k-steps that map to a nonzero adjacency block.
    @pl.when(k < kblk_cnt_ref[i])
    def _():
        acc_ref[...] += jnp.dot(a_ref[...], xk_ref[...],
                                preferred_element_type=jnp.float32)

    @pl.when(k == pl.num_programs(1) - 1)
    def _():
        # Deferred mean normalization in exact f32, then cast for the MXU.
        agg = (acc_ref[...] * invdeg_ref[...]).astype(jnp.bfloat16)
        # Fused neighbor + root branches as two dots into one f32 result
        # (no concatenate temp).
        out = jnp.dot(agg, wl_ref[...], preferred_element_type=jnp.float32)
        out += jnp.dot(xi_ref[...], wr_ref[...], preferred_element_type=jnp.float32)
        out += b_ref[...]
        if apply_relu:
            out = jnp.maximum(out, 0.0)
        o_ref[...] = out.astype(o_ref.dtype)


def sageconv_layer(a_bf, x_bf, inv_deg, wl_bf, wr_bf, b_pad,
                   kblk_ids, kblk_cnt, *, tile, apply_relu, out_dtype):
    n_pad = a_bf.shape[0]
    fin_p = x_bf.shape[1]
    fout_p = wl_bf.shape[1]
    nmt = n_pad // tile
    kmax = kblk_ids.shape[1]
    kernel = functools.partial(sageconv_kernel, apply_relu=apply_relu)

    # Actual VMEM usage (double-buffered inputs/outputs + single scratch).
    vmem_est = (2 * tile * tile * 2            # A tile, bf16, 2 buffers
                + 2 * 2 * tile * fin_p * 2     # Xk + Xi
                + 2 * 2 * fin_p * fout_p * 2   # W_l + W_r
                + 2 * tile * fout_p * 4        # out (f32 worst case)
                + tile * fin_p * 4             # f32 accumulator
                + 2 * (tile + fout_p) * 4)     # inv_deg + bias
    vmem_limit = int(min(max(2 * vmem_est, 32 << 20), 48 << 20))

    return pl.pallas_call(
        kernel,
        out_shape=jax.ShapeDtypeStruct((n_pad, fout_p), out_dtype),
        grid_spec=pltpu.PrefetchScalarGridSpec(
            num_scalar_prefetch=2,
            grid=(nmt, kmax),
            in_specs=[
                pl.BlockSpec((tile, tile),
                             lambda i, k, ids, cnt: (i, ids[i, k])),      # A counts
                pl.BlockSpec((tile, fin_p),
                             lambda i, k, ids, cnt: (ids[i, k], 0)),      # X (neighbors)
                pl.BlockSpec((tile, fin_p),
                             lambda i, k, ids, cnt: (i, 0)),              # X (self rows)
                pl.BlockSpec((tile, 1),
                             lambda i, k, ids, cnt: (i, 0)),              # 1/deg
                pl.BlockSpec((fin_p, fout_p),
                             lambda i, k, ids, cnt: (0, 0)),              # W_l
                pl.BlockSpec((fin_p, fout_p),
                             lambda i, k, ids, cnt: (0, 0)),              # W_r
                pl.BlockSpec((1, fout_p),
                             lambda i, k, ids, cnt: (0, 0)),              # bias
            ],
            out_specs=pl.BlockSpec((tile, fout_p),
                                   lambda i, k, ids, cnt: (i, 0)),
            scratch_shapes=[pltpu.VMEM((tile, fin_p), jnp.float32)],
        ),
        compiler_params=pltpu.CompilerParams(
            dimension_semantics=("parallel", "arbitrary"),
            vmem_limit_bytes=vmem_limit,
        ),
    )(kblk_ids, kblk_cnt, a_bf, x_bf, x_bf, inv_deg, wl_bf, wr_bf, b_pad)


# ------------------------------- JAX glue ---------------------------------- #
def build_graph_blocks(edge_index, n_pad, tile):
    """Host-side preprocessing:
      * dense adjacency edge-counts A [Np, Np] (bf16; small integers => exact)
      * exact f32 inverse in-degree [Np, 1]
      * block-CSR of nonzero TILE x TILE blocks per row tile (ids, counts).
    Padded k entries repeat the last valid block id so the pipeline issues no
    extra DMA for them; the kernel skips their compute with pl.when."""
    src = np.asarray(jax.device_get(edge_index[0]))
    dst = np.asarray(jax.device_get(edge_index[1]))
    counts = np.zeros((n_pad, n_pad), np.float32)
    np.add.at(counts, (dst, src), 1.0)
    deg = counts.sum(axis=1, keepdims=True)
    inv_deg = np.where(deg > 0.0, 1.0 / np.maximum(deg, 1.0), 0.0).astype(np.float32)

    nmt = n_pad // tile
    blk_nnz = counts.reshape(nmt, tile, nmt, tile).sum(axis=(1, 3)) > 0.0
    cnt = blk_nnz.sum(axis=1).astype(np.int32)
    kmax = max(int(cnt.max()) if cnt.size else 1, 1)
    ids = np.zeros((nmt, kmax), np.int32)
    for i in range(nmt):
        nz = np.nonzero(blk_nnz[i])[0].astype(np.int32)
        if nz.size:
            ids[i, :nz.size] = nz
            ids[i, nz.size:] = nz[-1]
    return (jnp.asarray(counts, dtype=jnp.bfloat16),
            jnp.asarray(inv_deg),
            jnp.asarray(ids),
            jnp.asarray(cnt))


def pad_layer_params(w_l, w_r, b):
    """Zero-pad weights/bias to 128-multiples; keep branches separate."""
    fin, fout = w_l.shape
    fin_p, fout_p = _round_up(fin, LANE), _round_up(fout, LANE)
    wl_p = jnp.zeros((fin_p, fout_p), jnp.float32).at[:fin, :fout].set(w_l)
    wr_p = jnp.zeros((fin_p, fout_p), jnp.float32).at[:fin, :fout].set(w_r)
    b_p = jnp.zeros((1, fout_p), jnp.float32).at[:, :fout].set(b)
    return wl_p.astype(jnp.bfloat16), wr_p.astype(jnp.bfloat16), b_p


def init_sage_params(key, in_channels, hidden_channels, out_channels, num_layers):
    """Each SAGEConv: lin_l [Fin,Fout] weight + [Fout] bias (neighbor branch),
    lin_r [Fin,Fout] weight, no bias (root branch)."""
    dims = [in_channels] + [hidden_channels] * (num_layers - 1) + [out_channels]
    params = []
    for layer in range(num_layers):
        f_in, f_out = dims[layer], dims[layer + 1]
        key, k1, k2, k3 = jax.random.split(key, 4)
        scale = 1.0 / jnp.sqrt(jnp.float32(f_in))
        w_l = jax.random.uniform(k1, (f_in, f_out), jnp.float32, -scale, scale)
        w_r = jax.random.uniform(k2, (f_in, f_out), jnp.float32, -scale, scale)
        b = jax.random.uniform(k3, (1, f_out), jnp.float32, -scale, scale)
        params.append((w_l, w_r, b))
    return params


def sage_forward(x, edge_index, params):
    """Pallas path: conv -> relu -> dropout(identity) per layer, last conv plain."""
    n, fin = x.shape
    tile, n_pad = choose_tile(n)
    fin_p = _round_up(fin, LANE)
    a_bf, inv_deg, kblk_ids, kblk_cnt = build_graph_blocks(edge_index, n_pad, tile)
    h = jnp.zeros((n_pad, fin_p), jnp.float32).at[:n, :fin].set(x).astype(jnp.bfloat16)

    num_layers = len(params)
    for i, (w_l, w_r, b) in enumerate(params):
        is_last = i == num_layers - 1
        wl_p, wr_p, b_p = pad_layer_params(w_l, w_r, b)
        out_dtype = jnp.float32 if is_last else jnp.bfloat16
        h = sageconv_layer(a_bf, h, inv_deg, wl_p, wr_p, b_p, kblk_ids, kblk_cnt,
                           tile=tile, apply_relu=not is_last, out_dtype=out_dtype)
        # dropout: identity (eval semantics)
    fout = params[-1][0].shape[1]
    return h[:n, :fout]


def sage_forward_matched_ref(x, edge_index, params):
    """Pure-JAX reference using the same padding / bf16-in, f32-accum math."""
    n, fin = x.shape
    tile, n_pad = choose_tile(n)
    fin_p = _round_up(fin, LANE)
    a_bf, inv_deg, _, _ = build_graph_blocks(edge_index, n_pad, tile)
    h = jnp.zeros((n_pad, fin_p), jnp.float32).at[:n, :fin].set(x).astype(jnp.bfloat16)
    num_layers = len(params)
    for i, (w_l, w_r, b) in enumerate(params):
        is_last = i == num_layers - 1
        wl_p, wr_p, b_p = pad_layer_params(w_l, w_r, b)
        acc = jnp.dot(a_bf, h, preferred_element_type=jnp.float32)
        agg = (acc * inv_deg).astype(jnp.bfloat16)
        out = (jnp.dot(agg, wl_p, preferred_element_type=jnp.float32)
               + jnp.dot(h, wr_p, preferred_element_type=jnp.float32) + b_p)
        if not is_last:
            out = jnp.maximum(out, 0.0)
            h = out.astype(jnp.bfloat16)
        else:
            h = out
    fout = params[-1][0].shape[1]
    return h[:n, :fout]


def sage_forward_f32_ref(x, edge_index, params):
    """Full-precision semantic reference (PyG SAGEConv mean aggregation)."""
    n = x.shape[0]
    src = np.asarray(jax.device_get(edge_index[0]))
    dst = np.asarray(jax.device_get(edge_index[1]))
    a = np.zeros((n, n), np.float32)
    np.add.at(a, (dst, src), 1.0)
    deg = a.sum(axis=1, keepdims=True)
    a = jnp.asarray(a / np.where(deg > 0, deg, 1.0))
    num_layers = len(params)
    for i, (w_l, w_r, b) in enumerate(params):
        out = (a @ x) @ w_l + x @ w_r + b
        if i != num_layers - 1:
            out = jnp.maximum(out, 0.0)
        x = out
    return x


# ---------------------------------- main ----------------------------------- #
if __name__ == "__main__":
    key = jax.random.PRNGKey(0)

    # small graph: N nodes, E directed edges (N padded to 512 -> 2 row tiles of 256)
    N = 300
    E = 900
    IN_CH, HID_CH, OUT_CH = 8, 32, 8
    NUM_LAYERS = 3
    DROPOUT = 0.5  # inactive in eval semantics

    key, kx, ke_src, ke_dst, kp = jax.random.split(key, 5)
    x = jax.random.normal(kx, (N, IN_CH), jnp.float32)
    src = jax.random.randint(ke_src, (E,), 0, N, jnp.int32)
    dst = jax.random.randint(ke_dst, (E,), 0, N, jnp.int32)
    edge_index = jnp.stack([src, dst], axis=0)  # [2, E]

    params = init_sage_params(kp, IN_CH, HID_CH, OUT_CH, NUM_LAYERS)

    out = sage_forward(x, edge_index, params)
    out = jax.block_until_ready(out)

    ref_matched = sage_forward_matched_ref(x, edge_index, params)
    ref_f32 = sage_forward_f32_ref(x, edge_index, params)

    assert out.shape == (N, OUT_CH), out.shape
    assert jnp.allclose(out, ref_matched, atol=2e-2, rtol=2e-2), \
        "mismatch vs precision-matched reference"
    assert jnp.allclose(out, ref_f32, atol=1e-1, rtol=1e-1), \
        "mismatch vs f32 semantic reference"

    print("KERNEL_OK")
</pallas_src>

<mosaic_0001>
module attributes {stable_mosaic.version = 11 : i64} {
  func.func @sageconv_kernel(%arg0: i32, %arg1: i32, %arg2: memref<2x2xi32, #tpu.memory_space<smem>>, %arg3: memref<2xi32, #tpu.memory_space<smem>>, %arg4: memref<256x256xbf16, #tpu.memory_space<vmem>>, %arg5: memref<256x128xbf16, #tpu.memory_space<vmem>>, %arg6: memref<256x128xbf16, #tpu.memory_space<vmem>>, %arg7: memref<256x1xf32, #tpu.memory_space<vmem>>, %arg8: memref<128x128xbf16, #tpu.memory_space<vmem>>, %arg9: memref<128x128xbf16, #tpu.memory_space<vmem>>, %arg10: memref<1x128xf32, #tpu.memory_space<vmem>>, %arg11: memref<256x128xbf16, #tpu.memory_space<vmem>>, %arg12: memref<256x128xf32, #tpu.memory_space<vmem>>) attributes {dimension_semantics = [#tpu.dimension_semantics<parallel>, #tpu.dimension_semantics<arbitrary>], iteration_bounds = array<i64: 2, 2>, scalar_prefetch = 2 : i64, scratch_operands = 1 : i64, tpu.core_type = #tpu.core_type<tc>, window_params = [{transform_indices = @transform_0, window_bounds = array<i64: 256, 256>}, {transform_indices = @transform_1, window_bounds = array<i64: 256, 128>}, {transform_indices = @transform_2, window_bounds = array<i64: 256, 128>}, {transform_indices = @transform_3, window_bounds = array<i64: 256, 1>}, {pipeline_mode = #tpu.pipeline_mode<synchronous>, transform_indices = @transform_4, window_bounds = array<i64: 128, 128>}, {pipeline_mode = #tpu.pipeline_mode<synchronous>, transform_indices = @transform_5, window_bounds = array<i64: 128, 128>}, {pipeline_mode = #tpu.pipeline_mode<synchronous>, transform_indices = @transform_6, window_bounds = array<i64: 1, 128>}, {transform_indices = @transform_7, window_bounds = array<i64: 256, 128>}]} {
    %c0_i32 = arith.constant 0 : i32
    %0 = arith.cmpi eq, %arg1, %c0_i32 : i32
    %1 = arith.extui %0 : i1 to i32
    %c0_i32_0 = arith.constant 0 : i32
    %2 = arith.cmpi ne, %1, %c0_i32_0 : i32
    scf.if %2 {
      %cst = arith.constant 0.000000e+00 : f32
      %11 = vector.broadcast %cst : f32 to vector<256x128xf32>
      %c0 = arith.constant 0 : index
      %c0_3 = arith.constant 0 : index
      %12 = vector.load %arg12[%c0, %c0_3] : memref<256x128xf32, #tpu.memory_space<vmem>>, vector<256x128xf32>
      tpu.vector_store %arg12[%c0, %c0_3], %11 {strides = array<i32>} : memref<256x128xf32, #tpu.memory_space<vmem>>, vector<256x128xf32>,
    } else {
    }
    %3 = arith.index_cast %arg0 : i32 to index
    %4 = memref.load %arg3[%3] : memref<2xi32, #tpu.memory_space<smem>>
    %5 = arith.cmpi slt, %arg1, %4 : i32
    %6 = arith.extui %5 : i1 to i32
    %c0_i32_1 = arith.constant 0 : i32
    %7 = arith.cmpi ne, %6, %c0_i32_1 : i32
    scf.if %7 {
      %c0 = arith.constant 0 : index
      %c0_3 = arith.constant 0 : index
      %11 = vector.load %arg12[%c0, %c0_3] : memref<256x128xf32, #tpu.memory_space<vmem>>, vector<256x128xf32>
      %c0_4 = arith.constant 0 : index
      %c0_5 = arith.constant 0 : index
      %12 = vector.load %arg4[%c0_4, %c0_5] : memref<256x256xbf16, #tpu.memory_space<vmem>>, vector<256x256xbf16>
      %c0_6 = arith.constant 0 : index
      %c0_7 = arith.constant 0 : index
      %13 = vector.load %arg5[%c0_6, %c0_7] : memref<256x128xbf16, #tpu.memory_space<vmem>>, vector<256x128xbf16>
      %cst = arith.constant dense<0.000000e+00> : vector<256x128xf32>
      %14 = tpu.matmul %12, %13, %cst {dimension_numbers = #tpu.dot_dimension_numbers<[1], [0], [0], [1], [0, 0, 1, 1], [], []>} : vector<256x256xbf16>, vector<256x128xbf16>, vector<256x128xf32> -> vector<256x128xf32>
      %15 = arith.addf %11, %14 : vector<256x128xf32>
      %c0_8 = arith.constant 0 : index
      %c0_9 = arith.constant 0 : index
      %16 = vector.load %arg12[%c0_8, %c0_9] : memref<256x128xf32, #tpu.memory_space<vmem>>, vector<256x128xf32>
      tpu.vector_store %arg12[%c0_8, %c0_9], %15 {strides = array<i32>} : memref<256x128xf32, #tpu.memory_space<vmem>>, vector<256x128xf32>,
    } else {
    }
    %c1_i32 = arith.constant 1 : i32
    %8 = arith.cmpi eq, %arg1, %c1_i32 : i32
    %9 = arith.extui %8 : i1 to i32
    %c0_i32_2 = arith.constant 0 : i32
    %10 = arith.cmpi ne, %9, %c0_i32_2 : i32
    scf.if %10 {
      %c0 = arith.constant 0 : index
      %c0_3 = arith.constant 0 : index
      %11 = vector.load %arg12[%c0, %c0_3] : memref<256x128xf32, #tpu.memory_space<vmem>>, vector<256x128xf32>
      %c0_4 = arith.constant 0 : index
      %c0_5 = arith.constant 0 : index
      %12 = vector.load %arg7[%c0_4, %c0_5] : memref<256x1xf32, #tpu.memory_space<vmem>>, vector<256x1xf32>
      %13 = vector.broadcast %12 : vector<256x1xf32> to vector<256x128xf32>
      %14 = arith.mulf %11, %13 : vector<256x128xf32>
      %15 = arith.truncf %14 : vector<256x128xf32> to vector<256x128xbf16>
      %c0_6 = arith.constant 0 : index
      %c0_7 = arith.constant 0 : index
      %16 = vector.load %arg8[%c0_6, %c0_7] : memref<128x128xbf16, #tpu.memory_space<vmem>>, vector<128x128xbf16>
      %cst = arith.constant dense<0.000000e+00> : vector<256x128xf32>
      %17 = tpu.matmul %15, %16, %cst {dimension_numbers = #tpu.dot_dimension_numbers<[1], [0], [0], [1], [0, 0, 1, 1], [], []>} : vector<256x128xbf16>, vector<128x128xbf16>, vector<256x128xf32> -> vector<256x128xf32>
      %c0_8 = arith.constant 0 : index
      %c0_9 = arith.constant 0 : index
      %18 = vector.load %arg6[%c0_8, %c0_9] : memref<256x128xbf16, #tpu.memory_space<vmem>>, vector<256x128xbf16>
      %c0_10 = arith.constant 0 : index
      %c0_11 = arith.constant 0 : index
      %19 = vector.load %arg9[%c0_10, %c0_11] : memref<128x128xbf16, #tpu.memory_space<vmem>>, vector<128x128xbf16>
      %cst_12 = arith.constant dense<0.000000e+00> : vector<256x128xf32>
      %20 = tpu.matmul %18, %19, %cst_12 {dimension_numbers = #tpu.dot_dimension_numbers<[1], [0], [0], [1], [0, 0, 1, 1], [], []>} : vector<256x128xbf16>, vector<128x128xbf16>, vector<256x128xf32> -> vector<256x128xf32>
      %21 = arith.addf %17, %20 : vector<256x128xf32>
      %c0_13 = arith.constant 0 : index
      %c0_14 = arith.constant 0 : index
      %22 = vector.load %arg10[%c0_13, %c0_14] : memref<1x128xf32, #tpu.memory_space<vmem>>, vector<1x128xf32>
      %23 = vector.broadcast %22 : vector<1x128xf32> to vector<256x128xf32>
      %24 = arith.addf %21, %23 : vector<256x128xf32>
      %cst_15 = arith.constant 0.000000e+00 : f32
      %25 = vector.broadcast %cst_15 : f32 to vector<256x128xf32>
      %26 = arith.maximumf %24, %25 : vector<256x128xf32>
      %27 = arith.truncf %26 : vector<256x128xf32> to vector<256x128xbf16>
      %c0_16 = arith.constant 0 : index
      %c0_17 = arith.constant 0 : index
      %28 = vector.load %arg11[%c0_16, %c0_17] : memref<256x128xbf16, #tpu.memory_space<vmem>>, vector<256x128xbf16>
      tpu.vector_store %arg11[%c0_16, %c0_17], %27 {strides = array<i32>} : memref<256x128xbf16, #tpu.memory_space<vmem>>, vector<256x128xbf16>,
    } else {
    }
    return
  }
  func.func @transform_0(%arg0: i32, %arg1: i32, %arg2: memref<2x2xi32, #tpu.memory_space<smem>>, %arg3: memref<2xi32, #tpu.memory_space<smem>>) -> (i32, i32) {
    %0 = arith.index_cast %arg0 : i32 to index
    %1 = arith.index_cast %arg1 : i32 to index
    %2 = memref.load %arg2[%0, %1] : memref<2x2xi32, #tpu.memory_space<smem>>
    %c0_i32 = arith.constant 0 : i32
    return %arg0, %2 : i32, i32
  }
  func.func @transform_1(%arg0: i32, %arg1: i32, %arg2: memref<2x2xi32, #tpu.memory_space<smem>>, %arg3: memref<2xi32, #tpu.memory_space<smem>>) -> (i32, i32) {
    %0 = arith.index_cast %arg0 : i32 to index
    %1 = arith.index_cast %arg1 : i32 to index
    %2 = memref.load %arg2[%0, %1] : memref<2x2xi32, #tpu.memory_space<smem>>
    %c0_i32 = arith.constant 0 : i32
    %c0_i32_0 = arith.constant 0 : i32
    return %2, %c0_i32 : i32, i32
  }
  func.func @transform_2(%arg0: i32, %arg1: i32, %arg2: memref<2x2xi32, #tpu.memory_space<smem>>, %arg3: memref<2xi32, #tpu.memory_space<smem>>) -> (i32, i32) {
    %c0_i32 = arith.constant 0 : i32
    %c0_i32_0 = arith.constant 0 : i32
    return %arg0, %c0_i32 : i32, i32
  }
  func.func @transform_3(%arg0: i32, %arg1: i32, %arg2: memref<2x2xi32, #tpu.memory_space<smem>>, %arg3: memref<2xi32, #tpu.memory_space<smem>>) -> (i32, i32) {
    %c0_i32 = arith.constant 0 : i32
    %c0_i32_0 = arith.constant 0 : i32
    return %arg0, %c0_i32 : i32, i32
  }
  func.func @transform_4(%arg0: i32, %arg1: i32, %arg2: memref<2x2xi32, #tpu.memory_space<smem>>, %arg3: memref<2xi32, #tpu.memory_space<smem>>) -> (i32, i32) {
    %c0_i32 = arith.constant 0 : i32
    %c0_i32_0 = arith.constant 0 : i32
    %c0_i32_1 = arith.constant 0 : i32
    return %c0_i32, %c0_i32_0 : i32, i32
  }
  func.func @transform_5(%arg0: i32, %arg1: i32, %arg2: memref<2x2xi32, #tpu.memory_space<smem>>, %arg3: memref<2xi32, #tpu.memory_space<smem>>) -> (i32, i32) {
    %c0_i32 = arith.constant 0 : i32
    %c0_i32_0 = arith.constant 0 : i32
    %c0_i32_1 = arith.constant 0 : i32
    return %c0_i32, %c0_i32_0 : i32, i32
  }
  func.func @transform_6(%arg0: i32, %arg1: i32, %arg2: memref<2x2xi32, #tpu.memory_space<smem>>, %arg3: memref<2xi32, #tpu.memory_space<smem>>) -> (i32, i32) {
    %c0_i32 = arith.constant 0 : i32
    %c0_i32_0 = arith.constant 0 : i32
    %c0_i32_1 = arith.constant 0 : i32
    return %c0_i32, %c0_i32_0 : i32, i32
  }
  func.func @transform_7(%arg0: i32, %arg1: i32, %arg2: memref<2x2xi32, #tpu.memory_space<smem>>, %arg3: memref<2xi32, #tpu.memory_space<smem>>) -> (i32, i32) {
    %c0_i32 = arith.constant 0 : i32
    %c0_i32_0 = arith.constant 0 : i32
    return %arg0, %c0_i32 : i32, i32
  }
}

</mosaic_0001>

<bundles_post_ra>
// kernel: tpu_custom_call.1
= control target key start
LH: loop header
LB: loop body
LE: loop exit
PB: predicated region body
PF: predicated region fallthrough
CT: control target
= control target key end

     0   :  { %s4059_s0 = inlined_call_operand.vmem [shape: s32[2,2], index: 0, kind: input, shape index: {}]   ;;  %s4060_s2 = inlined_call_operand.hbm [shape: bf16[512,512], index: 2, kind: input, shape index: {}]   ;;  %s4061_s3 = inlined_call_operand.vmem [shape: bf16[512,128], index: 3, kind: input, shape index: {}]   ;;  %s4062_s4 = inlined_call_operand.vmem [shape: bf16[512,128], index: 4, kind: input, shape index: {}]   ;;  %s4063_s5 = inlined_call_operand.vmem [shape: f32[512,1], index: 5, kind: input, shape index: {}]   ;;  %s4064_s6 = inlined_call_operand.hbm [shape: bf16[128,128], index: 6, kind: input, shape index: {}]   ;;  %s4065_s7 = inlined_call_operand.hbm [shape: bf16[128,128], index: 7, kind: input, shape index: {}]   ;;  %s4066_s8 = inlined_call_operand.vmem [shape: f32[1,128], index: 8, kind: input, shape index: {}]   ;;  %s4067_s9 = inlined_call_operand.hbm [shape: bf16[512,128], index: 9, kind: output, shape index: {}]   ;;  %s4068_s1 = inlined_call_operand.vmem [shape: s32[2], index: 1, kind: input, shape index: {}]  }
   0x1   :  { %4083 = sst [smem:[#allocation27_spill]] %s4061_s3  ;;  %s14_s11 = sshll.u32 %s4059_s0, 4  ;;  %s15_s11 = int_to_ptr.vmem [resolvable:$true] %s14_s11 }
   0x2   :  { %4084 = sst [smem:[#allocation28_spill]] %s4064_s6  ;;  %s18_s14 = sshll.u32 %s4068_s1, 4  ;;  %s19_s14 = int_to_ptr.vmem [resolvable:$true] %s18_s14 }
   0x3   :  { %4085 = sst [smem:[#allocation29_spill]] %s4065_s7  ;;  %s3190_s15 = scalar_lea.vmem %s15_s11, 32 }
   0x4   :  { %4086 = sst [smem:[#allocation30_spill]] %s4066_s8  ;;  %p3191_p0 = scmp.ne.s32.totalorder %s15_s11, %s3190_s15 }
   0x5   :  { %4087 = sst [smem:[#allocation31_spill]] %s4067_s9  ;;  %p3195_p1 = scmp.lt.s32.totalorder %s15_s11, %s15_s11 }
   0x6   :  { %p3196_p2 = scmp.lt.s32.totalorder %s3190_s15, %s3190_s15 }
   0x8   :  { %p3197_p3 = por %p3196_p2, %p3195_p1 }
   0xa   :  { %p3198_p4 = pnand %p3197_p3, %p3191_p0 }
   0xc   :  { %3201 = shalt.err (!%p3198_p4)  }
   0xd   :  { %s3430_s16 = smov [#allocation4]   ;;  %s3202_s17 = scalar_lea.vmem %s19_s14, 16 }
   0xe   :  { %17 = dma.vmem_to_smem %s15_s11, 32, %s3430_s16, [#allocation3] }
   0xf   :  { %p3203_p5 = scmp.ne.s32.totalorder %s19_s14, %s3202_s17  ;;  %p3207_p6 = scmp.lt.s32.totalorder %s19_s14, %s19_s14 }
  0x10   :  { %p3208_p7 = scmp.lt.s32.totalorder %s3202_s17, %s3202_s17 }
  0x12   :  { %p3209_p8 = por %p3208_p7, %p3207_p6 }
  0x14   :  { %p3210_p9 = pnand %p3209_p8, %p3203_p5 }
  0x16   :  { %3213 = shalt.err (!%p3210_p9)  }
  0x17   :  { %s3431_s0 = smov [#allocation5]  }
  0x18   :  { %21 = dma.vmem_to_smem %s19_s14, 16, %s3431_s0, [#allocation3] }
  0x19   :  { %3372 = dma.done.wait [#allocation3], 48 }
  0x1a   :  { %3373 = vsyncadd [#allocation3], 4294967248 }
  0x1b   :  { %23 = sfence }
  0x1c   :  { %24 = vsyncpa [#allocation7], 0 }
  0x1d   :  { %26 = vsyncpa [#allocation7 + $0x1], 0 }
  0x1e   :  { %27 = vsyncpa [#allocation10], 0 }
  0x1f   :  { %28 = vsyncpa [#allocation8], 0 }
  0x20   :  { %30 = vsyncpa [#allocation8 + $0x1], 0  ;;  %s3501_s1 = smov 0   ;;  %s3503_s18 = smov 0  }
  0x21   :  { %s3505_s19 = smov 0   ;;  %s3507_s20 = smov 0  }
  0x22   :  { %s3509_s21 = smov 0   ;;  %s3511_s22 = smov 0  }
  0x23   :  { %s3513_s23 = smov 0   ;;  %s3515_s24 = smov 0  }
  0x24   :  { %s3517_s25 = smov 0   ;;  %s3519_s26 = smov 0  }
  0x25   :  { %s3521_s27 = smov 0  }
  0x26 LB: > { %4088 = sst [smem:[#allocation19_spill]] %s3388_s1  ;;  %s2372_s28 = sadd.s32 4294967295, %s3428_s27   ;;  %s3428_s27 = sphi %s3521_s27, %s36_s27   ;;  %s3424_s26 = sphi %s3519_s26, %s4130_s26   ;;  %s3420_s25 = sphi %s3517_s25, %s4122_s25   ;;  %s3416_s24 = sphi %s3515_s24, %s4129_s24   ;;  %s3412_s23 = sphi %s3513_s23, %s4121_s23   ;;  %s3408_s22 = sphi %s3511_s22, %s4128_s22   ;;  %s3404_s21 = sphi %s3509_s21, %s4127_s21   ;;  %s3400_s20 = sphi %s3507_s20, %s4126_s20   ;;  %s3396_s19 = sphi %s3505_s19, %s4120_s19   ;;  %s3392_s18 = sphi %s3503_s18, %s4125_s18   ;;  %s3388_s1 = sphi %s3501_s1, %s4124_s1  }
  0x27   : > { %4089 = sst [smem:[#allocation20_spill]] %s3396_s19  ;;  %s2373_s29 = sadd.s32 4294967294, %s3428_s27  }
  0x28   : > { %4090 = sst [smem:[#allocation21_spill]] %s3420_s25  ;;  %p86_p10 = scmp.ne.s32.totalorder %s3404_s21, %s3400_s20 }
  0x29   : > { %p3559_p12 = scmp.eq.s32.totalorder %s2372_s28, 0  ;;  %p266_p0 = scmp.ne.s32.totalorder %s3396_s19, %s3392_s18 }
  0x2a   : > { %p267_p2 = scmp.eq.s32.totalorder %s2372_s28, 3  ;;  %p272_p3 = scmp.ne.s32.totalorder %s3392_s18, %s3388_s1 }
  0x2b   : > { %s4091_s30 = scalar_select %p3559_p12, 1, 0 }
  0x2c   : > { %p3568_p1 = por %p3559_p12, %p86_p10  ;;  %p273_p4 = scmp.eq.s32.totalorder %s2373_s29, 3 }
  0x2d   : > { %p3574_p5 = por %p267_p2, %p266_p0  ;;  %p2378_p6 = scmp.ge.s32.totalorder %s3428_s27, 1 }
  0x2e   : > { %s4092_s10 = scalar_select %p3568_p1, 1, 0 }
  0x2f   : > { %s4093_s11 = scalar_select %p3574_p5, 1, 0 }
  0x30   : > { %p3579_p7 = por %p273_p4, %p272_p3  ;;  %p280_p8 = scmp.lt.s32.totalorder %s3428_s27, 5 }
  0x31   : > { %4094 = sst [smem:[#allocation22_spill]] %s4093_s11  ;;  %s3432_s14 = smov [#allocation9]  }
  0x32   : > { %s4095_s12 = scalar_select %p3579_p7, 1, 0 }
  0x33   : > { %p3584_p9 = pnand %p2378_p6, %p280_p8  ;;  %s292_s15 = sshll.u32 %s3432_s14, 4  ;;  %s293_s15 = int_to_ptr.vmem [resolvable:$true] %s292_s15 }
  0x34   : > { %4096 = sst [smem:[#allocation23_spill]] %s4095_s12  ;;  %s3433_s17 = smov [#allocation11]  }
  0x35   : > { %s4097_s13 = scalar_select %p3584_p9, 1, 0 }
  0x36   : > { %p2968_p10 = pneg %p3584_p9  ;;  %s305_s0 = sshll.u32 %s3433_s17, 4  ;;  %s3596_s0 = int_to_ptr.vmem [resolvable:$true] %s305_s0 }
  0x37   : > { %s4099_s6 = sld [smem:[#allocation28_spill]] }
  0x38   : > { %p3592_p0 = pnand %p2968_p10, %p3559_p12 }
  0x3a   : > { %p3216_p3 = pneg %p3592_p0 }
  0x3d   : > { %s3214_s29 = scalar_lea.hbm %s4099_s6, 1024 }
  0x3e   : > { %p3215_p2 = scmp.ne.s32.totalorder %s4099_s6, %s3214_s29  ;;  %p3221_p8 = scmp.lt.u32.totalorder %s3214_s29, %s4099_s6 }
  0x40   : > { %p3217_p4 = pnand %p3216_p3, %p3215_p2 }
  0x42   : > { %p3218_p6 = pneg %p3217_p4 }
  0x44   : > { %p3223_p10 = pnand %p3221_p8, %p3218_p6 }
  0x46   : > { %3226 = shalt.err (!%p3223_p10)
}
  0x47   : > { %s3227_s17 = scalar_lea.vmem %s293_s15, 1024  ;;  %p3235_p5 = scmp.lt.s32.totalorder %s293_s15, %s293_s15 }
  0x48   : > { %p3228_p13 = scmp.ne.s32.totalorder %s293_s15, %s3227_s17  ;;  %p3236_p12 = scmp.lt.s32.totalorder %s3227_s17, %s3227_s17 }
  0x4a   : > { %p3230_p11 = pnand %p3228_p13, %p3216_p3  ;;  %p3237_p1 = por %p3236_p12, %p3235_p5 }
  0x4c   : > { %p3231_p7 = pneg %p3230_p11 }
  0x4e   : > { %p3238_p9 = pnand %p3237_p1, %p3231_p7 }
  0x50   : > { %3241 = shalt.err (!%p3238_p9)
}
  0x51   : > { %s3434_s12 = smov 64   ;;  %s3435_s20 = smov 4  }
  0x52   : > { %2971 = dma.hbm_to_vmem [thread:$0]  (!%p3592_p0), %s4099_s6, 1024, %s293_s15, [#allocation10], %s3434_s12, %s3434_s12, %s3435_s20  }
  0x53   : > { %s4100_s7 = sld [smem:[#allocation29_spill]] }
  0x59   : > { %s3242_s14 = scalar_lea.hbm %s4100_s7, 1024 }
  0x5a   : > { %p3243_p11 = scmp.ne.s32.totalorder %s4100_s7, %s3242_s14  ;;  %p3249_p1 = scmp.lt.u32.totalorder %s3242_s14, %s4100_s7 }
  0x5c   : > { %p3245_p12 = pnand %p3243_p11, %p3216_p3 }
  0x5e   : > { %p3246_p13 = pneg %p3245_p12 }
  0x60   : > { %p3251_p5 = pnand %p3249_p1, %p3246_p13 }
  0x62   : > { %3254 = shalt.err (!%p3251_p5)
}
  0x63   : > { %s3255_s15 = scalar_lea.vmem %s3596_s0, 1024  ;;  %p3263_p4 = scmp.lt.s32.totalorder %s3596_s0, %s3596_s0 }
  0x64   : > { %p3256_p7 = scmp.ne.s32.totalorder %s3596_s0, %s3255_s15  ;;  %p3264_p6 = scmp.lt.s32.totalorder %s3255_s15, %s3255_s15 }
  0x66   : > { %p3258_p9 = pnand %p3256_p7, %p3216_p3  ;;  %p3265_p8 = por %p3264_p6, %p3263_p4 }
  0x68   : > { %p3259_p2 = pneg %p3258_p9 }
  0x6a   : > { %p3266_p10 = pnand %p3265_p8, %p3259_p2 }
  0x6c   : > { %3269 = shalt.err (!%p3266_p10)
}
  0x6d   : > { %2974 = dma.hbm_to_vmem [thread:$0]  (!%p3592_p0), %s4100_s7, 1024, %s3596_s0, [#allocation10], %s3434_s12, %s3434_s12, %s3435_s20  }
  0x6e   : > { %s45_s11 = sadd.s32 1, %s3420_s25  ;;  %s48_s9 = sadd.s32 1, %s3424_s26 }
  0x6f   : > { %p46_p3 = scmp.ge.s32.totalorder %s45_s11, 2  ;;  %s52_s16 = sshra.s32 %s3420_s25, 7 }
  0x70   : > { %s54_s1 = sadd.s32 %s3424_s26, %s52_s16  ;;  %s57_s28 = sand.u32 127, %s3420_s25 }
  0x71   : > { %s4132_s11 = smov (%p46_p3, %s45_s11), 0  ;;  %s4134_s9 = smov (!%p46_p3, %s48_s9), %s3424_s26 }
  0x72   : > { %4101 = sst [smem:[#allocation24_spill]] %s4132_s11  ;;  %s256_s29 = sadd.s32 1, %s3396_s19 }
  0x73   : > { %s2374_s14 = sshll.u32 %s54_s1, 7  ;;  %p4102_p11 = scmp.ne.s32.totalorder %s3408_s22, %s3404_s21 }
  0x74   : > { %p4103_p12 = scmp.eq.s32.totalorder %s3428_s27, 0  ;;  %p50_p13 = scmp.ge.s32.totalorder %s4134_s9, 2 }
  0x75   : > { %s58_s12 = sadd.s32 %s2374_s14, %s57_s28  ;;  %s60_s20 = sshra.s32 %s4132_s11, 7 }
  0x76   : > { %p3659_p0 = por %p4103_p12, %p4102_p11  ;;  %s4136_s9 = smov (%p50_p13, %s4134_s9), 0 }
  0x77   : > { %4105 = sst [smem:[#allocation25_spill]] %s4136_s9  ;;  %s65_s15 = sand.u32 127, %s4132_s11 }
  0x78   : > { %s59_s17 = sld [smem:[#allocation4 + %s58_s12]]  ;;  %s62_s3 = sadd.s32 %s60_s20, %s4136_s9 }
  0x79   : > { %s68_s8 = ssub.s32 %s3424_s26, %s4136_s9  ;;  %s2375_s16 = sshll.u32 %s62_s3, 7 }
  0x7a   : > { %p254_p1 = scmp.eq.s32.totalorder %s68_s8, 0  ;;  %s66_s1 = sadd.s32 %s2375_s16, %s65_s15 }
  0x7b   : > { %s322_s6 = sand.u32 1, %s3408_s22   ;;  %s67_s7 = sld [smem:[#allocation4 + %s66_s1]] }
  0x7c   : > { %p2987_p5 = scmp.lt.s32.totalorder %s3428_s27, 4  ;;  %s2382_s14 = sshll.u32 %s322_s6, 8 }
  0x7d   : > { %s3673_s28 = scalar_select %p254_p1, %s3396_s19, %s256_s29  }
  0x7e   : > { %s2958_s25 = scalar_select %p3659_p0, [#allocation4], [#allocation13] }
  0x7f   : > { %4106 = sst [smem:[#allocation26_spill]] %s3673_s28  ;;  %s4138_s12 = smov (!%p3659_p0, %s58_s12), 0 }
  0x80   : > { %s4140_s25 = smov (!%p2987_p5, %s2958_s25), [#allocation14]  ;;  %s73_s11 = sadd.s32 1, %s3408_s22 }
  0x81   : > { %s69_s20 = ssub.s32 %s59_s17, %s67_s7  ;;  %p3682_p9 = pnand %p2987_p5, %p3659_p0 }
  0x82   : > { %s70_s9 = sor.u32 %s69_s20, %s68_s8  ;;  %s4142_s12 = smov (!%p2987_p5, %s4138_s12), 0 }
  0x83   : > { %p71_p7 = scmp.eq.s32.totalorder %s70_s9, 0  ;;  %s334_s15 = sld [smem:[%s4140_s25 + %s4142_s12]] }
  0x84   : > { %s326_s16 = scalar_lea.vmem [#allocation6], %s2382_s14  ;;  %s2521_s28 = sshll.u32 %s3424_s26, 7 }
  0x85   : > { %s3687_s29 = scalar_select %p71_p7, %s3408_s22, %s73_s11  }
  0x86   : > { %s344_s1 = sshll.u32 %s326_s16, 4  ;;  %s3697_s11 = scalar_lea.sflag [#allocation7], %s322_s6  ;;  %s3690_s1 = int_to_ptr.vmem [resolvable:$true] %s344_s1 }
  0x87   : > { %p3272_p4 = pneg %p3682_p9 }
  0x89   : > { %s2385_s19 = sshll.u32 %s334_s15, 1 }
  0x8a   : > { %s341_s7 = sadd.s32 %s2521_s28, %s2385_s19  ;;  %s3275_s28 = scalar_lea.hbm %s4060_s2, 16384 }
  0x8b   : > { %s2387_s17 = sshll.u32 %s341_s7, 6 }
  0x8c   : > { %s3695_s8 = scalar_lea.hbm %s4060_s2, %s2387_s17 }
  0x8d   : > { %s3270_s25 = scalar_lea.hbm %s3695_s8, 4096  ;;  %p3276_p10 = scmp.lt.u32.totalorder %s3695_s8, %s4060_s2 }
  0x8e   : > { %p3271_p2 = scmp.ne.s32.totalorder %s3695_s8, %s3270_s25  ;;  %p3277_p3 = scmp.lt.u32.totalorder %s3275_s28, %s3270_s25 }
  0x8f   : > { %p3279_p12 = scmp.lt.u32.totalorder %s3270_s25, %s3695_s8 }
  0x90   : > { %p3273_p6 = pnand %p3272_p4, %p3271_p2  ;;  %p3278_p11 = por %p3277_p3, %p3276_p10 }
  0x92   : > { %p3274_p8 = pneg %p3273_p6  ;;  %p3280_p0 = por %p3279_p12, %p3278_p11 }
  0x94   : > { %p3281_p13 = pnand %p3280_p0, %p3274_p8 }
  0x96   : > { %3284 = shalt.err (!%p3281_p13)
}
  0x97   : > { %s3285_s6 = scalar_lea.vmem %s3690_s1, 4096  ;;  %s3436_s15 = smov [#allocation6]  }
  0x98   : > { %p3286_p1 = scmp.ne.s32.totalorder %s3690_s1, %s3285_s6  ;;  %s3290_s16 = sshll.u32 %s3436_s15, 4  ;;  %s3291_s16 = int_to_ptr.vmem [resolvable:$false] %s3290_s16 }
  0x99   : > { %s3292_s7 = scalar_lea.vmem %s3291_s16, 8192  ;;  %p3293_p2 = scmp.lt.s32.totalorder %s3690_s1, %s3291_s16 }
  0x9a   : > { %p3288_p5 = pnand %p3286_p1, %p3272_p4  ;;  %p3294_p6 = scmp.lt.s32.totalorder %s3292_s7, %s3285_s6 }
  0x9c   : > { %p3289_p7 = pneg %p3288_p5  ;;  %p3295_p10 = por %p3294_p6, %p3293_p2 }
  0x9e   : > { %p3296_p3 = pnand %p3295_p10, %p3289_p7 }
  0xa0   : > { %3299 = shalt.err (!%p3296_p3)
}
  0xa1   : > { %s3437_s17 = smov 256   ;;  %s3438_s9 = smov 128  }
  0xa2   : > { %s3439_s0 = smov 8   ;;  %p4108_p4 = scmp.ne.s32.totalorder %s4097_s13, 0 }
  0xa3   : > { %2980 = dma.hbm_to_vmem [thread:$0]  (!%p3682_p9), %s3695_s8, 4096, %s3690_s1, %s3697_s11, %s3437_s17, %s3438_s9, %s3439_s0  }
  0xa4   : > { %399 = sbr.rel (%p4108_p4) target bundleno = 963 (0x3c3), region = 48  ;;  %s401_s25 = sand.u32 (!%p4108_p4), 1, %s3404_s21  }
  0xa5   : > { %s2389_s19 = sshll.u32 (!%p4108_p4), %s401_s25, 8  ;;  %s402_s12 = scalar_lea.sflag (!%p4108_p4), [#allocation7], %s401_s25 }
  0xa6   : > { %s3728_s28 = scalar_lea.vmem (!%p4108_p4), [#allocation6], %s2389_s19  ;;  %p4109_p8 = scmp.ne.s32.totalorder (!%p4108_p4), %s4092_s10, 0 }
  0xab   : > { %3375 = dma.done.wait (%p4109_p8), %s402_s12, 4096  }
  0xac   : > { %3377 = vsyncadd (%p4109_p8), %s402_s12, 4294963200  ;;  %p4110_p11 = scmp.ne.s32.totalorder %s4091_s30, 0 }
  0xae   : > { %3379 = dma.done.wait (%p4110_p11), [#allocation10], 2048  }
  0xaf   : > { %3381 = vsyncadd (%p4110_p11), [#allocation10], 4294965248  ;;  %s477_s13 = sshra.s32 %s3412_s23, 7  ;;  %s482_s3 = sand.u32 127, %s3412_s23 }
  0xb0   : > { %s479_s1 = sadd.s32 %s3416_s24, %s477_s13  ;;  %s464_s8 = sand.u32 1, %s3392_s18  }
  0xb1   : > { %s2393_s11 = sshll.u32 %s479_s1, 7  ;;  %s2392_s10 = sshll.u32 %s464_s8, 7 }
  0xb2   : > { %s483_s14 = sadd.s32 %s2393_s11, %s482_s3  ;;  %s2396_s6 = sshll.u32 %s3416_s24, 5 }
  0xb3   : > { %s484_s20 = sld [smem:[#allocation4 + %s483_s14]]  ;;  %p500_p9 = scmp.lt.s32.totalorder %s2396_s6, 63 }
  0xb4   : > { %s4111_s1 = sld [smem:[#allocation27_spill]]  ;;  %s3760_s14 = scalar_lea.vmem [#allocation12], %s2392_s10 }
  0xb5   : > { %s4144_s6 = smov (!%p500_p9, %s2396_s6), 63  ;;  %p2400_p0 = scmp.ne.s32.totalorder %s3412_s23, 0 }
  0xb6   : > { %s2397_s30 = sshll.u32 %s4144_s6, 2  ;;  %s2399_s15 = sshll.u32 %s4144_s6, 3  ;;  %v3440_v0 = vmov (!%p2400_p0), 0.0  }
  0xb7   : > { %s3748_s9 = scalar_lea.vmem %s4062_s4, %s2397_s30  ;;  %s3753_s19 = scalar_lea.vmem %s4063_s5, %s2399_s15  ;;  %517 = vst [vmem:[#allocation2] sm:$0xff] (!%p2400_p0), %v3440_v0  ;;  %518 = vst [vmem:[#allocation2 + $0x8] sm:$0xff] (!%p2400_p0), %v3440_v0 }
  0xb8   : > { %516 = sbr.rel (%p2400_p0) target bundleno = 199 (0xc7), region = 64  ;;  %519 = vst [vmem:[#allocation2 + $0x10] sm:$0xff] (!%p2400_p0), %v3440_v0  ;;  %520 = vst [vmem:[#allocation2 + $0x18] sm:$0xff] (!%p2400_p0), %v3440_v0 }
  0xb9   : > { %s2394_s16 = sshll.u32 %s484_s20, 5  ;;  %521 = vst [vmem:[#allocation2 + $0x20] sm:$0xff] (!%p2400_p0), %v3440_v0  ;;  %522 = vst [vmem:[#allocation2 + $0x28] sm:$0xff] (!%p2400_p0), %v3440_v0 }
  0xba   : > { %p486_p12 = scmp.lt.s32.totalorder %s2394_s16, 63  ;;  %523 = vst [vmem:[#allocation2 + $0x30] sm:$0xff] (!%p2400_p0), %v3440_v0  ;;  %524 = vst [vmem:[#allocation2 + $0x38] sm:$0xff] (!%p2400_p0), %v3440_v0 }
  0xbb   : > { %525 = vst [vmem:[#allocation2 + $0x40] sm:$0xff] (!%p2400_p0), %v3440_v0  ;;  %526 = vst [vmem:[#allocation2 + $0x48] sm:$0xff] (!%p2400_p0), %v3440_v0 }
  0xbc   : > { %s4146_s16 = smov (!%p486_p12, %s2394_s16), 63  ;;  %527 = vst [vmem:[#allocation2 + $0x50] sm:$0xff] (!%p2400_p0), %v3440_v0  ;;  %528 = vst [vmem:[#allocation2 + $0x58] sm:$0xff] (!%p2400_p0), %v3440_v0 }
  0xbd   : > { %s2395_s12 = sshll.u32 %s4146_s16, 2  ;;  %529 = vst [vmem:[#allocation2 + $0x60] sm:$0xff] (!%p2400_p0), %v3440_v0  ;;  %530 = vst [vmem:[#allocation2 + $0x68] sm:$0xff] (!%p2400_p0), %v3440_v0 }
  0xbe   : > { %s3758_s11 = scalar_lea.vmem %s4111_s1, %s2395_s12  ;;  %531 = vst [vmem:[#allocation2 + $0x70] sm:$0xff] (!%p2400_p0), %v3440_v0  ;;  %532 = vst [vmem:[#allocation2 + $0x78] sm:$0xff] (!%p2400_p0), %v3440_v0 }
  0xbf   : > { %533 = vst [vmem:[#allocation2 + $0x80] sm:$0xff] %v3440_v0  ;;  %534 = vst [vmem:[#allocation2 + $0x88] sm:$0xff] %v3440_v0 }
  0xc0   : > { %535 = vst [vmem:[#allocation2 + $0x90] sm:$0xff] %v3440_v0  ;;  %536 = vst [vmem:[#allocation2 + $0x98] sm:$0xff] %v3440_v0 }
  0xc1   : > { %537 = vst [vmem:[#allocation2 + $0xa0] sm:$0xff] %v3440_v0  ;;  %538 = vst [vmem:[#allocation2 + $0xa8] sm:$0xff] %v3440_v0 }
  0xc2   : > { %539 = vst [vmem:[#allocation2 + $0xb0] sm:$0xff] %v3440_v0  ;;  %540 = vst [vmem:[#allocation2 + $0xb8] sm:$0xff] %v3440_v0 }
  0xc3   : > { %541 = vst [vmem:[#allocation2 + $0xc0] sm:$0xff] %v3440_v0  ;;  %542 = vst [vmem:[#allocation2 + $0xc8] sm:$0xff] %v3440_v0 }
  0xc4   : > { %543 = vst [vmem:[#allocation2 + $0xd0] sm:$0xff] %v3440_v0  ;;  %544 = vst [vmem:[#allocation2 + $0xd8] sm:$0xff] %v3440_v0 }
  0xc5   : > { %545 = vst [vmem:[#allocation2 + $0xe0] sm:$0xff] %v3440_v0  ;;  %546 = vst [vmem:[#allocation2 + $0xe8] sm:$0xff] %v3440_v0 }
  0xc6   : > { %547 = vst [vmem:[#allocation2 + $0xf0] sm:$0xff] %v3440_v0  ;;  %548 = vst [vmem:[#allocation2 + $0xf8] sm:$0xff] %v3440_v0 }
  0xc7 PF: > { %s549_s10 = sld [smem:[#allocation5 + %s3416_s24]] }
  0xcd   : > { %p2401_p13 = scmp.ge.s32.totalorder %s3412_s23, %s549_s10 }
  0xce   : > { %v3092_v1 = vld [vmem:[%s3758_s11 + $0x40] sm:$0xff] (!%p2401_p13)   ;;  %v3094_v3 = vld [vmem:[%s3758_s11 + $0x48] sm:$0xff] (!%p2401_p13)   ;;  %v3096_v5 = vld [vmem:[%s3758_s11 + $0x50] sm:$0xff] (!%p2401_p13)  }
  0xcf   : > { %553 = sbr.rel (%p2401_p13) target bundleno = 515 (0x203), region = 68  ;;  %v3093_v2 = vld [vmem:[%s3758_s11] sm:$0xff] (!%p2401_p13)   ;;  %2650 = vmatprep.subr.bf16.mxu0 (!%p2401_p13), %v3092_v1  ;;  %2906 = vmatprep.subr.bf16.mxu1 (!%p2401_p13), %v3092_v1  ;;  %v3095_v4 = vld [vmem:[%s3758_s11 + $0x8] sm:$0xff] (!%p2401_p13)   ;;  %v3097_v6 = vld [vmem:[%s3758_s11 + $0x10] sm:$0xff] (!%p2401_p13)  }
  0xd0   : > { %2651 = vmatpush3.bf16.msra.mxu0 (!%p2401_p13), %v3093_v2  ;;  %2914 = vmatpush3.bf16.msra.mxu1 (!%p2401_p13), %v3093_v2  ;;  %v3098_v7 = vld [vmem:[%s3758_s11 + $0x58] sm:$0xff] (!%p2401_p13)   ;;  %v3100_v9 = vld [vmem:[%s3758_s11 + $0x60] sm:$0xff] (!%p2401_p13)   ;;  %v3102_v11 = vld [vmem:[%s3758_s11 + $0x68] sm:$0xff] (!%p2401_p13)  }
  0xd1   : > { %2652 = vmatprep.subr.bf16.mxu0 (!%p2401_p13), %v3094_v3  ;;  %2907 = vmatprep.subr.bf16.mxu1 (!%p2401_p13), %v3094_v3  ;;  %v3099_v8 = vld [vmem:[%s3758_s11 + $0x18] sm:$0xff] (!%p2401_p13)   ;;  %v3101_v10 = vld [vmem:[%s3758_s11 + $0x20] sm:$0xff] (!%p2401_p13)   ;;  %v3103_v14 = vld [vmem:[%s3758_s11 + $0x28] sm:$0xff] (!%p2401_p13)  }
  0xd2   : > { %v3110_v12 = vld [vmem:[%s3728_s28 + $0x4] ss:$8 sps:$4 sm:$0xff] (!%p2401_p13)   ;;  %v3104_v15 = vld [vmem:[%s3758_s11 + $0x70] sm:$0xff] (!%p2401_p13)   ;;  %v3106_v17 = vld [vmem:[%s3758_s11 + $0x78] sm:$0xff] (!%p2401_p13)  }
  0xd3   : > { %v3113_v13 = vld [vmem:[%s3728_s28 + $0x84] ss:$8 sps:$4 sm:$0xff] (!%p2401_p13)   ;;  %938 = vmatprep.mubr.bf16.mxu0 (!%p2401_p13), %v3110_v12  ;;  %v3105_v16 = vld [vmem:[%s3758_s11 + $0x30] sm:$0xff] (!%p2401_p13)   ;;  %v3107_v18 = vld [vmem:[%s3758_s11 + $0x38] sm:$0xff] (!%p2401_p13)  }
  0xd4   : > { %2653 = vmatpush3.bf16.msra.mxu0 (!%p2401_p13), %v3095_v4  ;;  %2915 = vmatpush3.bf16.msra.mxu1 (!%p2401_p13), %v3095_v4  ;;  %v3108_v19 = vld [vmem:[%s3728_s28] ss:$8 sps:$4 sm:$0xff] (!%p2401_p13)   ;;  %v3114_v21 = vld [vmem:[%s3728_s28 + $0x14] ss:$8 sps:$4 sm:$0xff] (!%p2401_p13)   ;;  %v3118_v23 = vld [vmem:[%s3728_s28 + $0x10] ss:$8 sps:$4 sm:$0xff] (!%p2401_p13)  }
  0xd5   : > { %2654 = vmatprep.subr.bf16.mxu0 (!%p2401_p13), %v3096_v5  ;;  %2908 = vmatprep.subr.bf16.mxu1 (!%p2401_p13), %v3096_v5  ;;  %v3111_v20 = vld [vmem:[%s3728_s28 + $0x80] ss:$8 sps:$4 sm:$0xff] (!%p2401_p13)   ;;  %v3116_v22 = vld [vmem:[%s3728_s28 + $0x94] ss:$8 sps:$4 sm:$0xff] (!%p2401_p13)   ;;  %v3119_v24 = vld [vmem:[%s3728_s28 + $0x90] ss:$8 sps:$4 sm:$0xff] (!%p2401_p13)  }
  0xd6   : > { %1002 = vmatprep.mubr.bf16.mxu1 %v3113_v13  ;;  %v3120_v25 = vld [vmem:[%s3728_s28 + $0x24] ss:$8 sps:$4 sm:$0xff]   ;;  %v3124_v27 = vld [vmem:[%s3728_s28 + $0x20] ss:$8 sps:$4 sm:$0xff]   ;;  %v3126_v29 = vld [vmem:[%s3728_s28 + $0x34] ss:$8 sps:$4 sm:$0xff]  }
  0xd7   : > { %v3122_v26 = vld [vmem:[%s3728_s28 + $0xa4] ss:$8 sps:$4 sm:$0xff]   ;;  %v3125_v28 = vld [vmem:[%s3728_s28 + $0xa0] ss:$8 sps:$4 sm:$0xff]   ;;  %v3128_v30 = vld [vmem:[%s3728_s28 + $0xb4] ss:$8 sps:$4 sm:$0xff]  }
  0xd8   : > { %2655 = vmatpush3.bf16.msra.mxu0 %v3097_v6  ;;  %2916 = vmatpush3.bf16.msra.mxu1 %v3097_v6  ;;  %v3130_v31 = vld [vmem:[%s3728_s28 + $0x30] ss:$8 sps:$4 sm:$0xff]   ;;  %v3132_v33 = vld [vmem:[%s3728_s28 + $0x44] ss:$8 sps:$4 sm:$0xff]   ;;  %v3136_v35 = vld [vmem:[%s3728_s28 + $0x40] ss:$8 sps:$4 sm:$0xff]  }
  0xd9   : > { %2656 = vmatprep.subr.bf16.mxu0 %v3098_v7  ;;  %2909 = vmatprep.subr.bf16.mxu1 %v3098_v7  ;;  %v3131_v32 = vld [vmem:[%s3728_s28 + $0xb0] ss:$8 sps:$4 sm:$0xff]   ;;  %v3134_v34 = vld [vmem:[%s3728_s28 + $0xc4] ss:$8 sps:$4 sm:$0xff]   ;;  %v3137_v36 = vld [vmem:[%s3728_s28 + $0xc0] ss:$8 sps:$4 sm:$0xff]  }
  0xda   : > { %v3138_v37 = vld [vmem:[%s3728_s28 + $0x54] ss:$8 sps:$4 sm:$0xff]   ;;  %v3142_v39 = vld [vmem:[%s3728_s28 + $0x50] ss:$8 sps:$4 sm:$0xff]   ;;  %v3144_v41 = vld [vmem:[%s3728_s28 + $0x64] ss:$8 sps:$4 sm:$0xff]  }
  0xdb   : > { %v3140_v38 = vld [vmem:[%s3728_s28 + $0xd4] ss:$8 sps:$4 sm:$0xff]   ;;  %v3143_v40 = vld [vmem:[%s3728_s28 + $0xd0] ss:$8 sps:$4 sm:$0xff]   ;;  %v3146_v42 = vld [vmem:[%s3728_s28 + $0xe4] ss:$8 sps:$4 sm:$0xff]  }
  0xdc   : > { %2657 = vmatpush3.bf16.msra.mxu0 %v3099_v8  ;;  %2917 = vmatpush3.bf16.msra.mxu1 %v3099_v8  ;;  %v3148_v43 = vld [vmem:[%s3728_s28 + $0x60] ss:$8 sps:$4 sm:$0xff]   ;;  %v3150_v45 = vld [vmem:[%s3728_s28 + $0x74] ss:$8 sps:$4 sm:$0xff]   ;;  %v3154_v47 = vld [vmem:[%s3728_s28 + $0x70] ss:$8 sps:$4 sm:$0xff]  }
  0xdd   : > { %2658 = vmatprep.subr.bf16.mxu0 %v3100_v9  ;;  %2910 = vmatprep.subr.bf16.mxu1 %v3100_v9  ;;  %v3149_v44 = vld [vmem:[%s3728_s28 + $0xe0] ss:$8 sps:$4 sm:$0xff]   ;;  %v3152_v46 = vld [vmem:[%s3728_s28 + $0xf4] ss:$8 sps:$4 sm:$0xff]   ;;  %v3155_v48 = vld [vmem:[%s3728_s28 + $0xf0] ss:$8 sps:$4 sm:$0xff]  }
  0xde   : > { %v554_v51 = vld [vmem:[#allocation2] sm:$0xff]  ;;  %v555_v59 = vld [vmem:[#allocation2 + $0x8] sm:$0xff]  ;;  %v556_v7 = vld [vmem:[#allocation2 + $0x10] sm:$0xff] }
  0xdf   : > { %v570_v53 = vld [vmem:[#allocation2 + $0x80] sm:$0xff]  ;;  %v571_v61 = vld [vmem:[#allocation2 + $0x88] sm:$0xff]  ;;  %v572_v9 = vld [vmem:[#allocation2 + $0x90] sm:$0xff] }
  0xe0   : > { %2659 = vmatpush3.bf16.msra.mxu0 %v3101_v10  ;;  %2918 = vmatpush3.bf16.msra.mxu1 %v3101_v10 }
  0xe1   : > { %2660 = vmatprep.subr.bf16.mxu0 %v3102_v11  ;;  %2911 = vmatprep.subr.bf16.mxu1 %v3102_v11 }
  0xe4   : > { %2661 = vmatpush3.bf16.msra.mxu0 %v3103_v14  ;;  %2919 = vmatpush3.bf16.msra.mxu1 %v3103_v14 }
  0xe5   : > { %2662 = vmatprep.subr.bf16.mxu0 %v3104_v15  ;;  %2912 = vmatprep.subr.bf16.mxu1 %v3104_v15  ;;  %v557_v15 = vld [vmem:[#allocation2 + $0x18] sm:$0xff] }
  0xe8   : > { %2663 = vmatpush3.bf16.msra.mxu0 %v3105_v16  ;;  %2920 = vmatpush3.bf16.msra.mxu1 %v3105_v16 }
  0xe9   : > { %2664 = vmatprep.subr.bf16.mxu0 %v3106_v17  ;;  %2913 = vmatprep.subr.bf16.mxu1 %v3106_v17  ;;  %v573_v17 = vld [vmem:[#allocation2 + $0x98] sm:$0xff] }
  0xec   : > { %2665 = vmatpush3.bf16.msra.mxu0 %v3107_v18  ;;  %2921 = vmatpush3.bf16.msra.mxu1 %v3107_v18 }
  0xef   : > { %939 = vmatmul.mubr.bf16.vlgmr.msra.gmra.mrb[0].mxu0 %v3108_v19  ;;  %1003 = vmatmul.mubr.bf16.vlgmr.msra.gmra.mrb[0].mxu1 %v3111_v20 }
  0xf0   : > { %946 = vmatprep.mubr.bf16.mxu0 %v3114_v21  ;;  %1010 = vmatprep.mubr.bf16.mxu1 %v3116_v22 }
  0xf7   : > { %947 = vmatmul.mubr.bf16.gmra.mrb[4].mxu0 %v3118_v23  ;;  %1011 = vmatmul.mubr.bf16.gmra.mrb[4].mxu1 %v3119_v24 }
  0xf8   : > { %954 = vmatprep.mubr.bf16.mxu0 %v3120_v25  ;;  %1018 = vmatprep.mubr.bf16.mxu1 %v3122_v26 }
  0xff   : > { %955 = vmatmul.mubr.bf16.gmra.mrb[8].mxu0 %v3124_v27  ;;  %1019 = vmatmul.mubr.bf16.gmra.mrb[8].mxu1 %v3125_v28  ;;  %v558_v27 = vld [vmem:[#allocation2 + $0x20] sm:$0xff] }
 0x100   : > { %962 = vmatprep.mubr.bf16.mxu0 %v3126_v29  ;;  %1026 = vmatprep.mubr.bf16.mxu1 %v3128_v30  ;;  %v574_v29 = vld [vmem:[#allocation2 + $0xa0] sm:$0xff] }
 0x107   : > { %963 = vmatmul.mubr.bf16.gmra.mrb[12].mxu0 %v3130_v31  ;;  %1027 = vmatmul.mubr.bf16.gmra.mrb[12].mxu1 %v3131_v32 }
 0x108   : > { %970 = vmatprep.mubr.bf16.mxu0 %v3132_v33  ;;  %1034 = vmatprep.mubr.bf16.mxu1 %v3134_v34 }
 0x10f   : > { %971 = vmatmul.mubr.bf16.gmra.mrb[16].mxu0 %v3136_v35  ;;  %1035 = vmatmul.mubr.bf16.gmra.mrb[16].mxu1 %v3137_v36  ;;  %v559_v35 = vld [vmem:[#allocation2 + $0x28] sm:$0xff] }
 0x110   : > { %978 = vmatprep.mubr.bf16.mxu0 %v3138_v37  ;;  %1042 = vmatprep.mubr.bf16.mxu1 %v3140_v38  ;;  %v575_v37 = vld [vmem:[#allocation2 + $0xa8] sm:$0xff] }
 0x117   : > { %979 = vmatmul.mubr.bf16.gmra.mrb[20].mxu0 %v3142_v39  ;;  %1043 = vmatmul.mubr.bf16.gmra.mrb[20].mxu1 %v3143_v40 }
 0x118   : > { %986 = vmatprep.mubr.bf16.mxu0 %v3144_v41  ;;  %1050 = vmatprep.mubr.bf16.mxu1 %v3146_v42 }
 0x11f   : > { %987 = vmatmul.mubr.bf16.gmra.mrb[24].mxu0 %v3148_v43  ;;  %1051 = vmatmul.mubr.bf16.gmra.mrb[24].mxu1 %v3149_v44 }
 0x120   : > { %994 = vmatprep.mubr.bf16.mxu0 %v3150_v45  ;;  %1058 = vmatprep.mubr.bf16.mxu1 %v3152_v46 }
 0x127   : > { %995 = vmatmul.mubr.bf16.gmra.mrb[28].mxu0 %v3154_v47  ;;  %1059 = vmatmul.mubr.bf16.gmra.mrb[28].mxu1 %v3155_v48  ;;  %v560_v47 = vld [vmem:[#allocation2 + $0x30] sm:$0xff] }
 0x1c2   : > { %v2666_v49 = vpop.f32.mrb[0].mxu0  ;;  %v2714_v50 = vpop.f32.mrb[0].mxu1 }
 0x1c3   : > { %v2667_v52 = vpop.f32.mrb[1].mxu0  ;;  %v2715_v54 = vpop.f32.mrb[1].mxu1 }
 0x1c4   : > { %v2668_v55 = vadd.f32 %v2667_v52, %v2666_v49  ;;  %v2716_v56 = vadd.f32 %v2715_v54, %v2714_v50  ;;  %v2669_v57 = vpop.f32.mrb[2].mxu0  ;;  %v2717_v58 = vpop.f32.mrb[2].mxu1  ;;  %v576_v49 = vld [vmem:[#allocation2 + $0xb0] sm:$0xff] }
 0x1c5   : > { %v2670_v60 = vpop.f32.mrb[3].mxu0  ;;  %v2718_v62 = vpop.f32.mrb[3].mxu1 }
 0x1c6   : > { %v1067_v63 = vadd.f32 %v2668_v55, %v554_v51  ;;  %v1083_v0 = vadd.f32 %v2716_v56, %v570_v53  ;;  %v2671_v1 = vadd.f32 %v2670_v60, %v2669_v57  ;;  %v2719_v2 = vadd.f32 %v2718_v62, %v2717_v58  ;;  %v561_v55 = vld [vmem:[#allocation2 + $0x38] sm:$0xff] }
 0x1c7   : > { %v577_v57 = vld [vmem:[#allocation2 + $0xb8] sm:$0xff] }
 0x1c8   : > { %1099 = vst [vmem:[#allocation2] sm:$0xff] %v1067_v63  ;;  %1115 = vst [vmem:[#allocation2 + $0x80] sm:$0xff] %v1083_v0  ;;  %v1068_v3 = vadd.f32 %v2671_v1, %v555_v59  ;;  %v1084_v4 = vadd.f32 %v2719_v2, %v571_v61 }
 0x1ca   : > { %1100 = vst [vmem:[#allocation2 + $0x8] sm:$0xff] %v1068_v3  ;;  %1116 = vst [vmem:[#allocation2 + $0x88] sm:$0xff] %v1084_v4  ;;  %v2672_v5 = vpop.f32.mrb[4].mxu0  ;;  %v2720_v6 = vpop.f32.mrb[4].mxu1  ;;  %v562_v3 = vld [vmem:[#allocation2 + $0x40] sm:$0xff] }
 0x1cb   : > { %v2673_v8 = vpop.f32.mrb[5].mxu0  ;;  %v2721_v10 = vpop.f32.mrb[5].mxu1 }
 0x1cc   : > { %v2674_v11 = vadd.f32 %v2673_v8, %v2672_v5  ;;  %v2722_v12 = vadd.f32 %v2721_v10, %v2720_v6  ;;  %v2675_v13 = vpop.f32.mrb[6].mxu0  ;;  %v2723_v14 = vpop.f32.mrb[6].mxu1  ;;  %v578_v5 = vld [vmem:[#allocation2 + $0xc0] sm:$0xff] }
 0x1cd   : > { %v2676_v16 = vpop.f32.mrb[7].mxu0  ;;  %v2724_v18 = vpop.f32.mrb[7].mxu1 }
 0x1ce   : > { %v1069_v19 = vadd.f32 %v2674_v11, %v556_v7  ;;  %v1085_v20 = vadd.f32 %v2722_v12, %v572_v9  ;;  %v2677_v21 = vadd.f32 %v2676_v16, %v2675_v13  ;;  %v2725_v22 = vadd.f32 %v2724_v18, %v2723_v14  ;;  %v563_v11 = vld [vmem:[#allocation2 + $0x48] sm:$0xff] }
 0x1cf   : > { %v579_v13 = vld [vmem:[#allocation2 + $0xc8] sm:$0xff] }
 0x1d0   : > { %1101 = vst [vmem:[#allocation2 + $0x10] sm:$0xff] %v1069_v19  ;;  %1117 = vst [vmem:[#allocation2 + $0x90] sm:$0xff] %v1085_v20  ;;  %v1070_v23 = vadd.f32 %v2677_v21, %v557_v15  ;;  %v1086_v24 = vadd.f32 %v2725_v22, %v573_v17 }
 0x1d2   : > { %1102 = vst [vmem:[#allocation2 + $0x18] sm:$0xff] %v1070_v23  ;;  %1118 = vst [vmem:[#allocation2 + $0x98] sm:$0xff] %v1086_v24  ;;  %v2678_v25 = vpop.f32.mrb[8].mxu0  ;;  %v2726_v26 = vpop.f32.mrb[8].mxu1  ;;  %v564_v23 = vld [vmem:[#allocation2 + $0x50] sm:$0xff] }
 0x1d3   : > { %v2679_v28 = vpop.f32.mrb[9].mxu0  ;;  %v2727_v30 = vpop.f32.mrb[9].mxu1 }
 0x1d4   : > { %v2680_v31 = vadd.f32 %v2679_v28, %v2678_v25  ;;  %v2728_v32 = vadd.f32 %v2727_v30, %v2726_v26  ;;  %v2681_v33 = vpop.f32.mrb[10].mxu0  ;;  %v2729_v34 = vpop.f32.mrb[10].mxu1  ;;  %v580_v25 = vld [vmem:[#allocation2 + $0xd0] sm:$0xff] }
 0x1d5   : > { %v2682_v36 = vpop.f32.mrb[11].mxu0  ;;  %v2730_v38 = vpop.f32.mrb[11].mxu1 }
 0x1d6   : > { %v1071_v39 = vadd.f32 %v2680_v31, %v558_v27  ;;  %v1087_v40 = vadd.f32 %v2728_v32, %v574_v29  ;;  %v2683_v41 = vadd.f32 %v2682_v36, %v2681_v33  ;;  %v2731_v42 = vadd.f32 %v2730_v38, %v2729_v34  ;;  %v565_v31 = vld [vmem:[#allocation2 + $0x58] sm:$0xff] }
 0x1d7   : > { %v581_v33 = vld [vmem:[#allocation2 + $0xd8] sm:$0xff] }
 0x1d8   : > { %1103 = vst [vmem:[#allocation2 + $0x20] sm:$0xff] %v1071_v39  ;;  %1119 = vst [vmem:[#allocation2 + $0xa0] sm:$0xff] %v1087_v40  ;;  %v1072_v43 = vadd.f32 %v2683_v41, %v559_v35  ;;  %v1088_v44 = vadd.f32 %v2731_v42, %v575_v37 }
 0x1da   : > { %1104 = vst [vmem:[#allocation2 + $0x28] sm:$0xff] %v1072_v43  ;;  %1120 = vst [vmem:[#allocation2 + $0xa8] sm:$0xff] %v1088_v44  ;;  %v2684_v45 = vpop.f32.mrb[12].mxu0  ;;  %v2732_v46 = vpop.f32.mrb[12].mxu1  ;;  %v566_v43 = vld [vmem:[#allocation2 + $0x60] sm:$0xff] }
 0x1db   : > { %v2685_v48 = vpop.f32.mrb[13].mxu0  ;;  %v2733_v50 = vpop.f32.mrb[13].mxu1 }
 0x1dc   : > { %v2686_v51 = vadd.f32 %v2685_v48, %v2684_v45  ;;  %v2734_v52 = vadd.f32 %v2733_v50, %v2732_v46  ;;  %v2687_v53 = vpop.f32.mrb[14].mxu0  ;;  %v2735_v54 = vpop.f32.mrb[14].mxu1  ;;  %v582_v45 = vld [vmem:[#allocation2 + $0xe0] sm:$0xff] }
 0x1dd   : > { %v2688_v56 = vpop.f32.mrb[15].mxu0  ;;  %v2736_v58 = vpop.f32.mrb[15].mxu1 }
 0x1de   : > { %v1073_v59 = vadd.f32 %v2686_v51, %v560_v47  ;;  %v1089_v60 = vadd.f32 %v2734_v52, %v576_v49  ;;  %v2689_v61 = vadd.f32 %v2688_v56, %v2687_v53  ;;  %v2737_v62 = vadd.f32 %v2736_v58, %v2735_v54  ;;  %v567_v51 = vld [vmem:[#allocation2 + $0x68] sm:$0xff] }
 0x1df   : > { %v583_v53 = vld [vmem:[#allocation2 + $0xe8] sm:$0xff] }
 0x1e0   : > { %1105 = vst [vmem:[#allocation2 + $0x30] sm:$0xff] %v1073_v59  ;;  %1121 = vst [vmem:[#allocation2 + $0xb0] sm:$0xff] %v1089_v60  ;;  %v1074_v63 = vadd.f32 %v2689_v61, %v561_v55  ;;  %v1090_v0 = vadd.f32 %v2737_v62, %v577_v57 }
 0x1e2   : > { %1106 = vst [vmem:[#allocation2 + $0x38] sm:$0xff] %v1074_v63  ;;  %1122 = vst [vmem:[#allocation2 + $0xb8] sm:$0xff] %v1090_v0  ;;  %v2690_v1 = vpop.f32.mrb[16].mxu0  ;;  %v2738_v2 = vpop.f32.mrb[16].mxu1  ;;  %v568_v63 = vld [vmem:[#allocation2 + $0x70] sm:$0xff] }
 0x1e3   : > { %v2691_v4 = vpop.f32.mrb[17].mxu0  ;;  %v2739_v6 = vpop.f32.mrb[17].mxu1 }
 0x1e4   : > { %v2692_v7 = vadd.f32 %v2691_v4, %v2690_v1  ;;  %v2740_v8 = vadd.f32 %v2739_v6, %v2738_v2  ;;  %v2693_v9 = vpop.f32.mrb[18].mxu0  ;;  %v2741_v10 = vpop.f32.mrb[18].mxu1  ;;  %v584_v1 = vld [vmem:[#allocation2 + $0xf0] sm:$0xff] }
 0x1e5   : > { %v2694_v12 = vpop.f32.mrb[19].mxu0  ;;  %v2742_v14 = vpop.f32.mrb[19].mxu1 }
 0x1e6   : > { %v1075_v15 = vadd.f32 %v2692_v7, %v562_v3  ;;  %v1091_v16 = vadd.f32 %v2740_v8, %v578_v5  ;;  %v2695_v17 = vadd.f32 %v2694_v12, %v2693_v9  ;;  %v2743_v18 = vadd.f32 %v2742_v14, %v2741_v10  ;;  %v569_v7 = vld [vmem:[#allocation2 + $0x78] sm:$0xff] }
 0x1e7   : > { %v585_v9 = vld [vmem:[#allocation2 + $0xf8] sm:$0xff] }
 0x1e8   : > { %1107 = vst [vmem:[#allocation2 + $0x40] sm:$0xff] %v1075_v15  ;;  %1123 = vst [vmem:[#allocation2 + $0xc0] sm:$0xff] %v1091_v16  ;;  %v1076_v19 = vadd.f32 %v2695_v17, %v563_v11  ;;  %v1092_v20 = vadd.f32 %v2743_v18, %v579_v13 }
 0x1ea   : > { %1108 = vst [vmem:[#allocation2 + $0x48] sm:$0xff] %v1076_v19  ;;  %1124 = vst [vmem:[#allocation2 + $0xc8] sm:$0xff] %v1092_v20  ;;  %v2696_v21 = vpop.f32.mrb[20].mxu0  ;;  %v2744_v22 = vpop.f32.mrb[20].mxu1 }
 0x1eb   : > { %v2697_v24 = vpop.f32.mrb[21].mxu0  ;;  %v2745_v26 = vpop.f32.mrb[21].mxu1 }
 0x1ec   : > { %v2698_v27 = vadd.f32 %v2697_v24, %v2696_v21  ;;  %v2746_v28 = vadd.f32 %v2745_v26, %v2744_v22  ;;  %v2699_v29 = vpop.f32.mrb[22].mxu0  ;;  %v2747_v30 = vpop.f32.mrb[22].mxu1 }
 0x1ed   : > { %v2700_v32 = vpop.f32.mrb[23].mxu0  ;;  %v2748_v34 = vpop.f32.mrb[23].mxu1 }
 0x1ee   : > { %v1077_v35 = vadd.f32 %v2698_v27, %v564_v23  ;;  %v1093_v36 = vadd.f32 %v2746_v28, %v580_v25  ;;  %v2701_v37 = vadd.f32 %v2700_v32, %v2699_v29  ;;  %v2749_v38 = vadd.f32 %v2748_v34, %v2747_v30 }
 0x1f0   : > { %1109 = vst [vmem:[#allocation2 + $0x50] sm:$0xff] %v1077_v35  ;;  %1125 = vst [vmem:[#allocation2 + $0xd0] sm:$0xff] %v1093_v36  ;;  %v1078_v39 = vadd.f32 %v2701_v37, %v565_v31  ;;  %v1094_v40 = vadd.f32 %v2749_v38, %v581_v33 }
 0x1f2   : > { %1110 = vst [vmem:[#allocation2 + $0x58] sm:$0xff] %v1078_v39  ;;  %1126 = vst [vmem:[#allocation2 + $0xd8] sm:$0xff] %v1094_v40  ;;  %v2702_v41 = vpop.f32.mrb[24].mxu0  ;;  %v2750_v42 = vpop.f32.mrb[24].mxu1 }
 0x1f3   : > { %v2703_v44 = vpop.f32.mrb[25].mxu0  ;;  %v2751_v46 = vpop.f32.mrb[25].mxu1 }
 0x1f4   : > { %v2704_v47 = vadd.f32 %v2703_v44, %v2702_v41  ;;  %v2752_v48 = vadd.f32 %v2751_v46, %v2750_v42  ;;  %v2705_v49 = vpop.f32.mrb[26].mxu0  ;;  %v2753_v50 = vpop.f32.mrb[26].mxu1 }
 0x1f5   : > { %v2706_v52 = vpop.f32.mrb[27].mxu0  ;;  %v2754_v54 = vpop.f32.mrb[27].mxu1 }
 0x1f6   : > { %v1079_v55 = vadd.f32 %v2704_v47, %v566_v43  ;;  %v1095_v56 = vadd.f32 %v2752_v48, %v582_v45  ;;  %v2707_v57 = vadd.f32 %v2706_v52, %v2705_v49  ;;  %v2755_v58 = vadd.f32 %v2754_v54, %v2753_v50 }
 0x1f8   : > { %1111 = vst [vmem:[#allocation2 + $0x60] sm:$0xff] %v1079_v55  ;;  %1127 = vst [vmem:[#allocation2 + $0xe0] sm:$0xff] %v1095_v56  ;;  %v1080_v59 = vadd.f32 %v2707_v57, %v567_v51  ;;  %v1096_v60 = vadd.f32 %v2755_v58, %v583_v53 }
 0x1fa   : > { %1112 = vst [vmem:[#allocation2 + $0x68] sm:$0xff] %v1080_v59  ;;  %1128 = vst [vmem:[#allocation2 + $0xe8] sm:$0xff] %v1096_v60  ;;  %v2708_v61 = vpop.f32.mrb[28].mxu0  ;;  %v2756_v62 = vpop.f32.mrb[28].mxu1 }
 0x1fb   : > { %v2709_v0 = vpop.f32.mrb[29].mxu0  ;;  %v2757_v2 = vpop.f32.mrb[29].mxu1 }
 0x1fc   : > { %v2710_v3 = vadd.f32 %v2709_v0, %v2708_v61  ;;  %v2758_v4 = vadd.f32 %v2757_v2, %v2756_v62  ;;  %v2711_v5 = vpop.f32.mrb[30].mxu0  ;;  %v2759_v6 = vpop.f32.mrb[30].mxu1 }
 0x1fd   : > { %v2712_v8 = vpop.f32.mrb[31].mxu0  ;;  %v2760_v10 = vpop.f32.mrb[31].mxu1 }
 0x1fe   : > { %v1081_v11 = vadd.f32 %v2710_v3, %v568_v63  ;;  %v1097_v12 = vadd.f32 %v2758_v4, %v584_v1  ;;  %v2713_v13 = vadd.f32 %v2712_v8, %v2711_v5  ;;  %v2761_v14 = vadd.f32 %v2760_v10, %v2759_v6 }
 0x200   : > { %1113 = vst [vmem:[#allocation2 + $0x70] sm:$0xff] %v1081_v11  ;;  %1129 = vst [vmem:[#allocation2 + $0xf0] sm:$0xff] %v1097_v12  ;;  %v1082_v15 = vadd.f32 %v2713_v13, %v569_v7  ;;  %v1098_v16 = vadd.f32 %v2761_v14, %v585_v9 }
 0x202   : > { %1114 = vst [vmem:[#allocation2 + $0x78] sm:$0xff] %v1082_v15  ;;  %1130 = vst [vmem:[#allocation2 + $0xf8] sm:$0xff] %v1098_v16 }
 0x203 PF: > { %p2450_p1 = scmp.ne.s32.totalorder %s3412_s23, 1 }
 0x204   : > { %v1169_v17 = vld [vmem:[%s3753_s19 + $0x10] sm:$0xff] (!%p2450_p1)  ;;  %v1167_v18 = vld [vmem:[%s3753_s19] sm:$0xff] (!%p2450_p1)  ;;  %v3441_v19 = vmov (!%p2450_p1), 0   ;;  %v1170_v20 = vld [vmem:[%s3753_s19 + $0x18] sm:$0xff] (!%p2450_p1)  ;;  %s4112_s20 = sld [smem:[#allocation30_spill]] (!%p2450_p1) }
 0x205   : > { %1134 = sbr.rel (%p2450_p1) target bundleno = 935 (0x3a7), region = 72  ;;  %3157 = vset.pattern.permute.xlu1 (!%p2450_p1), %v3441_v19  ;;  %3156 = vset.pattern.permute.xlu0 (!%p2450_p1), %v3441_v19  ;;  %v1168_v21 = vld [vmem:[%s3753_s19 + $0x8] sm:$0xff] (!%p2450_p1)  ;;  %v1171_v23 = vld [vmem:[%s3753_s19 + $0x20] sm:$0xff] (!%p2450_p1)  ;;  %v1174_v24 = vld [vmem:[%s3753_s19 + $0x38] sm:$0xff] (!%p2450_p1) }
 0x206   : > { %1211 = vperm.xlu1 (!%p2450_p1), %3157, %v1169_v17   ;;  %1201 = vperm.xlu0 (!%p2450_p1), %3156, %v1167_v18   ;;  %v1172_v22 = vld [vmem:[%s3753_s19 + $0x28] sm:$0xff] (!%p2450_p1)  ;;  %v1173_v25 = vld [vmem:[%s3753_s19 + $0x30] sm:$0xff] (!%p2450_p1)  ;;  %v3158_v26 = vld [vmem:[#allocation11] sm:$0xff] (!%p2450_p1)  }
 0x207   : > { %v3159_v27 = vld [vmem:[#allocation9] sm:$0xff] (!%p2450_p1)   ;;  %v1176_v28 = vld [vmem:[%s3753_s19 + $0x48] sm:$0xff] (!%p2450_p1)  ;;  %2810 = vmatprep.subr.bf16.mxu1 (!%p2450_p1), %v3158_v26  ;;  %v3162_v32 = vld [vmem:[#allocation11 + $0x10] sm:$0xff] (!%p2450_p1)  }
 0x208   : > { %v3160_v29 = vld [vmem:[#allocation11 + $0x8] sm:$0xff] (!%p2450_p1)   ;;  %v1175_v31 = vld [vmem:[%s3753_s19 + $0x40] sm:$0xff] (!%p2450_p1)  ;;  %2811 = vmatpush3.bf16.msra.mxu1 (!%p2450_p1), %v3158_v26  ;;  %2858 = vmatprep.subr.bf16.mxu0 (!%p2450_p1), %v3159_v27  ;;  %v3163_v33 = vld [vmem:[#allocation9 + $0x10] sm:$0xff] (!%p2450_p1)  }
 0x209   : > { %v3161_v30 = vld [vmem:[#allocation9 + $0x8] sm:$0xff] (!%p2450_p1)   ;;  %2812 = vmatprep.subr.bf16.mxu1 (!%p2450_p1), %v3160_v29  ;;  %2859 = vmatpush3.bf16.msra.mxu0 (!%p2450_p1), %v3159_v27  ;;  %v1178_v34 = vld [vmem:[%s3753_s19 + $0x58] sm:$0xff] (!%p2450_p1)  ;;  %v1177_v35 = vld [vmem:[%s3753_s19 + $0x50] sm:$0xff] (!%p2450_p1) }
 0x20a   : > { %1216 = vperm.xlu1 (!%p2450_p1), %3157, %v1170_v20   ;;  %1206 = vperm.xlu0 (!%p2450_p1), %3156, %v1168_v21   ;;  %v3164_v36 = vld [vmem:[#allocation11 + $0x18] sm:$0xff] (!%p2450_p1)   ;;  %v1180_v38 = vld [vmem:[%s3753_s19 + $0x68] sm:$0xff] (!%p2450_p1)  ;;  %v1179_v39 = vld [vmem:[%s3753_s19 + $0x60] sm:$0xff] (!%p2450_p1) }
 0x20b   : > { %2860 = vmatprep.subr.bf16.mxu0 (!%p2450_p1), %v3161_v30  ;;  %v3165_v37 = vld [vmem:[#allocation9 + $0x18] sm:$0xff] (!%p2450_p1)   ;;  %v3166_v40 = vld [vmem:[#allocation11 + $0x20] sm:$0xff] (!%p2450_p1)   ;;  %v1181_v43 = vld [vmem:[%s3753_s19 + $0x70] sm:$0xff] (!%p2450_p1) }
 0x20c   : > { %2813 = vmatpush3.bf16.msra.mxu1 %v3160_v29  ;;  %v3167_v41 = vld [vmem:[#allocation9 + $0x20] sm:$0xff]   ;;  %v1182_v42 = vld [vmem:[%s3753_s19 + $0x78] sm:$0xff]  ;;  %v3168_v45 = vld [vmem:[#allocation11 + $0x28] sm:$0xff]  }
 0x20d   : > { %2814 = vmatprep.subr.bf16.mxu1 %v3162_v32  ;;  %2861 = vmatpush3.bf16.msra.mxu0 %v3161_v30  ;;  %v3173_v44 = vld [vmem:[%s3748_s9] sm:$0xff]   ;;  %v3169_v46 = vld [vmem:[#allocation9 + $0x28] sm:$0xff]   ;;  %v3170_v49 = vld [vmem:[#allocation11 + $0x30] sm:$0xff]  }
 0x20e   : > { %1226 = vperm.xlu1 %3157, %v1172_v22   ;;  %1221 = vperm.xlu0 %3156, %v1171_v23   ;;  %v1184_v47 = vld [vmem:[%s3753_s19 + $0x88] sm:$0xff]  ;;  %v1183_v48 = vld [vmem:[%s3753_s19 + $0x80] sm:$0xff]  ;;  %v3171_v50 = vld [vmem:[#allocation9 + $0x30] sm:$0xff]  }
 0x20f   : > { %2862 = vmatprep.subr.bf16.mxu0 %v3163_v33  ;;  %2826 = vmatprep.mubr.bf16.mxu1 %v3173_v44  ;;  %v1186_v51 = vld [vmem:[%s3753_s19 + $0x98] sm:$0xff]  ;;  %v1185_v52 = vld [vmem:[%s3753_s19 + $0x90] sm:$0xff]  ;;  %v1188_v55 = vld [vmem:[%s3753_s19 + $0xa8] sm:$0xff] }
 0x210   : > { %2815 = vmatpush3.bf16.msra.mxu1 %v3162_v32  ;;  %v3172_v53 = vld [vmem:[#allocation11 + $0x38] sm:$0xff]   ;;  %v1187_v56 = vld [vmem:[%s3753_s19 + $0xa0] sm:$0xff]  ;;  %v1189_v58 = vld [vmem:[%s3753_s19 + $0xb0] sm:$0xff] }
 0x211   : > { %2816 = vmatprep.subr.bf16.mxu1 %v3164_v36  ;;  %2863 = vmatpush3.bf16.msra.mxu0 %v3163_v33  ;;  %v3174_v54 = vld [vmem:[#allocation9 + $0x38] sm:$0xff]   ;;  %v3175_v59 = vld [vmem:[%s3748_s9 + $0x8] sm:$0xff]   ;;  %v3176_v60 = vld [vmem:[%s3748_s9 + $0x10] sm:$0xff]  }
 0x212   : > { %1236 = vperm.xlu1 %3157, %v1174_v24   ;;  %1231 = vperm.xlu0 %3156, %v1173_v25   ;;  %v1190_v57 = vld [vmem:[%s3753_s19 + $0xb8] sm:$0xff]  ;;  %v1192_v61 = vld [vmem:[%s3753_s19 + $0xc8] sm:$0xff]  ;;  %v1191_v62 = vld [vmem:[%s3753_s19 + $0xc0] sm:$0xff] }
 0x213   : > { %2864 = vmatprep.subr.bf16.mxu0 %v3165_v37  ;;  %v1194_v63 = vld [vmem:[%s3753_s19 + $0xd8] sm:$0xff]  ;;  %v1193_v0 = vld [vmem:[%s3753_s19 + $0xd0] sm:$0xff]  ;;  %v3178_v2 = vld [vmem:[%s3748_s9 + $0x20] sm:$0xff]  }
 0x214   : > { %2817 = vmatpush3.bf16.msra.mxu1 %v3164_v36  ;;  %v3177_v1 = vld [vmem:[%s3748_s9 + $0x18] sm:$0xff]   ;;  %v1196_v3 = vld [vmem:[%s3753_s19 + $0xe8] sm:$0xff]  ;;  %v1195_v4 = vld [vmem:[%s3753_s19 + $0xe0] sm:$0xff] }
 0x215   : > { %2818 = vmatprep.subr.bf16.mxu1 %v3166_v40  ;;  %2865 = vmatpush3.bf16.msra.mxu0 %v3165_v37  ;;  %v1198_v5 = vld [vmem:[%s3753_s19 + $0xf8] sm:$0xff]  ;;  %v1197_v6 = vld [vmem:[%s3753_s19 + $0xf0] sm:$0xff]  ;;  %v3179_v7 = vld [vmem:[%s3748_s9 + $0x28] sm:$0xff]  }
 0x216   : > { %1246 = vperm.xlu1 %3157, %v1176_v28   ;;  %1241 = vperm.xlu0 %3156, %v1175_v31   ;;  %v3180_v8 = vld [vmem:[%s3748_s9 + $0x30] sm:$0xff]   ;;  %v3181_v9 = vld [vmem:[%s3748_s9 + $0x38] sm:$0xff]   ;;  %v3182_v10 = vld [vmem:[%s3748_s9 + $0x40] sm:$0xff]  }
 0x217   : > { %2866 = vmatprep.subr.bf16.mxu0 %v3167_v41  ;;  %v3183_v11 = vld [vmem:[%s3748_s9 + $0x48] sm:$0xff]   ;;  %v3184_v12 = vld [vmem:[%s3748_s9 + $0x50] sm:$0xff]   ;;  %v3185_v13 = vld [vmem:[%s3748_s9 + $0x58] sm:$0xff]  }
 0x218   : > { %2819 = vmatpush3.bf16.msra.mxu1 %v3166_v40  ;;  %v3186_v14 = vld [vmem:[%s3748_s9 + $0x60] sm:$0xff]   ;;  %v3187_v15 = vld [vmem:[%s3748_s9 + $0x68] sm:$0xff]   ;;  %v3188_v16 = vld [vmem:[%s3748_s9 + $0x70] sm:$0xff]  }
 0x219   : > { %2820 = vmatprep.subr.bf16.mxu1 %v3168_v45  ;;  %2867 = vmatpush3.bf16.msra.mxu0 %v3167_v41  ;;  %v3189_v17 = vld [vmem:[%s3748_s9 + $0x78] sm:$0xff]   ;;  %v1137_v20 = vld [vmem:[#allocation2 + $0x10] sm:$0xff]  ;;  %v1135_v21 = vld [vmem:[#allocation2] sm:$0xff] }
 0x21a   : > { %1256 = vperm.xlu1 %3157, %v1178_v34   ;;  %1251 = vperm.xlu0 %3156, %v1177_v35   ;;  %v1138_v22 = vld [vmem:[#allocation2 + $0x18] sm:$0xff]  ;;  %v1136_v23 = vld [vmem:[#allocation2 + $0x8] sm:$0xff]  ;;  %v1139_v31 = vld [vmem:[#allocation2 + $0x20] sm:$0xff] }
 0x21b   : > { %2868 = vmatprep.subr.bf16.mxu0 %v3169_v46  ;;  %v1140_v30 = vld [vmem:[#allocation2 + $0x28] sm:$0xff] }
 0x21c   : > { %2821 = vmatpush3.bf16.msra.mxu1 %v3168_v45  ;;  %v1144_v45 = vld [vmem:[#allocation2 + $0x48] sm:$0xff] }
 0x21d   : > { %2822 = vmatprep.subr.bf16.mxu1 %v3170_v49  ;;  %2869 = vmatpush3.bf16.msra.mxu0 %v3169_v46  ;;  %v1143_v46 = vld [vmem:[#allocation2 + $0x40] sm:$0xff] }
 0x21e   : > { %1266 = vperm.xlu1 %3157, %v1180_v38   ;;  %1261 = vperm.xlu0 %3156, %v1179_v39   ;;  %v1142_v38 = vld [vmem:[#allocation2 + $0x38] sm:$0xff]  ;;  %v1141_v39 = vld [vmem:[#allocation2 + $0x30] sm:$0xff] }
 0x21f   : > { %2870 = vmatprep.subr.bf16.mxu0 %v3171_v50 }
 0x220   : > { %2823 = vmatpush3.bf16.msra.mxu1 %v3170_v49 }
 0x221   : > { %2824 = vmatprep.subr.bf16.mxu1 %v3172_v53  ;;  %2871 = vmatpush3.bf16.msra.mxu0 %v3171_v50 }
 0x222   : > { %1276 = vperm.xlu1 %3157, %v1182_v42   ;;  %1271 = vperm.xlu0 %3156, %v1181_v43  }
 0x223   : > { %2872 = vmatprep.subr.bf16.mxu0 %v3174_v54 }
 0x224   : > { %2825 = vmatpush3.bf16.msra.mxu1 %v3172_v53  ;;  %v1145_v53 = vld [vmem:[#allocation2 + $0x50] sm:$0xff] }
 0x225   : > { %2873 = vmatpush3.bf16.msra.mxu0 %v3174_v54 }
 0x226   : > { %1286 = vperm.xlu1 %3157, %v1184_v47   ;;  %1281 = vperm.xlu0 %3156, %v1183_v48  }
 0x227   : > { %2827 = vmatmul.mubr.bf16.vlgmr.msra.gmra.mrb[0].mxu1 %v3175_v59  ;;  %v1148_v59 = vld [vmem:[#allocation2 + $0x68] sm:$0xff] }
 0x228   : > { %2830 = vmatprep.mubr.bf16.mxu1 %v3176_v60  ;;  %v1147_v60 = vld [vmem:[#allocation2 + $0x60] sm:$0xff] }
 0x22a   : > { %1296 = vperm.xlu1 %3157, %v1186_v51   ;;  %1291 = vperm.xlu0 %3156, %v1185_v52   ;;  %v1146_v52 = vld [vmem:[#allocation2 + $0x58] sm:$0xff] }
 0x22e   : > { %1306 = vperm.xlu1 %3157, %v1188_v55   ;;  %1301 = vperm.xlu0 %3156, %v1187_v56  }
 0x22f   : > { %2831 = vmatmul.mubr.bf16.gmra.mrb[4].mxu1 %v3177_v1 }
 0x230   : > { %2834 = vmatprep.mubr.bf16.mxu1 %v3178_v2  ;;  %v1150_v2 = vld [vmem:[#allocation2 + $0x78] sm:$0xff] }
 0x232   : > { %1316 = vperm.xlu1 %3157, %v1190_v57   ;;  %1311 = vperm.xlu0 %3156, %v1189_v58  }
 0x236   : > { %1326 = vperm.xlu1 %3157, %v1192_v61   ;;  %1321 = vperm.xlu0 %3156, %v1191_v62  }
 0x237   : > { %2835 = vmatmul.mubr.bf16.gmra.mrb[8].mxu1 %v3179_v7 }
 0x238   : > { %2838 = vmatprep.mubr.bf16.mxu1 %v3180_v8 }
 0x23a   : > { %1336 = vperm.xlu1 %3157, %v1194_v63   ;;  %1331 = vperm.xlu0 %3156, %v1193_v0  }
 0x23e   : > { %1346 = vperm.xlu1 %3157, %v1196_v3   ;;  %1341 = vperm.xlu0 %3156, %v1195_v4   ;;  %v1149_v3 = vld [vmem:[#allocation2 + $0x70] sm:$0xff] }
 0x23f   : > { %2839 = vmatmul.mubr.bf16.gmra.mrb[12].mxu1 %v3181_v9  ;;  %v1152_v9 = vld [vmem:[#allocation2 + $0x88] sm:$0xff] }
 0x240   : > { %2842 = vmatprep.mubr.bf16.mxu1 %v3182_v10  ;;  %v1151_v10 = vld [vmem:[#allocation2 + $0x80] sm:$0xff] }
 0x242   : > { %1356 = vperm.xlu1 %3157, %v1198_v5   ;;  %1351 = vperm.xlu0 %3156, %v1197_v6  }
 0x247   : > { %2843 = vmatmul.mubr.bf16.gmra.mrb[16].mxu1 %v3183_v11 }
 0x248   : > { %2846 = vmatprep.mubr.bf16.mxu1 %v3184_v12 }
 0x24f   : > { %2847 = vmatmul.mubr.bf16.gmra.mrb[20].mxu1 %v3185_v13 }
 0x250   : > { %2850 = vmatprep.mubr.bf16.mxu1 %v3186_v14 }
 0x257   : > { %2851 = vmatmul.mubr.bf16.gmra.mrb[24].mxu1 %v3187_v15 }
 0x258   : > { %2854 = vmatprep.mubr.bf16.mxu1 %v3188_v16  ;;  %v1154_v16 = vld [vmem:[#allocation2 + $0x98] sm:$0xff] }
 0x25f   : > { %2855 = vmatmul.mubr.bf16.gmra.mrb[28].mxu1 %v3189_v17  ;;  %v1153_v17 = vld [vmem:[#allocation2 + $0x90] sm:$0xff] }
 0x285   : > { %v1212_v18 = vpop.permute.xlu1 %1211  ;;  %v1202_v19 = vpop.permute.xlu0 %1201 }
 0x286   : > { %v1361_v26 = vmul.f32 %v1212_v18, %v1137_v20  ;;  %v1359_v27 = vmul.f32 %v1202_v19, %v1135_v21 }
 0x289   : > { %v1217_v24 = vpop.permute.xlu1 %1216  ;;  %v1207_v25 = vpop.permute.xlu0 %1206 }
 0x28a   : > { %v1362_v28 = vmul.f32 %v1217_v24, %v1138_v22  ;;  %v1360_v29 = vmul.f32 %v1207_v25, %v1136_v23  ;;  %v1156_v23 = vld [vmem:[#allocation2 + $0xa8] sm:$0xff]  ;;  %v1155_v24 = vld [vmem:[#allocation2 + $0xa0] sm:$0xff] }
 0x28c   : > { %v1392_v32 = vpack.c.bf16 %v1362_v28, %v1361_v26  ;;  %v1391_v33 = vpack.c.bf16 %v1360_v29, %v1359_v27 }
 0x28d   : > { %v1227_v34 = vpop.permute.xlu1 %1226  ;;  %v1222_v35 = vpop.permute.xlu0 %1221 }
 0x28e   : > { %v1364_v36 = vmul.f32 %v1227_v34, %v1140_v30  ;;  %v1363_v37 = vmul.f32 %v1222_v35, %v1139_v31  ;;  %2874 = vmatprep.mubr.bf16.mxu0 %v1391_v33  ;;  %v1158_v30 = vld [vmem:[#allocation2 + $0xb8] sm:$0xff]  ;;  %v1157_v31 = vld [vmem:[#allocation2 + $0xb0] sm:$0xff] }
 0x28f   : > { %2875 = vmatmul.mubr.bf16.vlgmr.msra.gmra.mrb[0].mxu0 %v1392_v32 }
 0x290   : > { %v1393_v40 = vpack.c.bf16 %v1364_v36, %v1363_v37  ;;  %v1160_v37 = vld [vmem:[#allocation2 + $0xc8] sm:$0xff] }
 0x291   : > { %v1237_v41 = vpop.permute.xlu1 %1236  ;;  %v1232_v42 = vpop.permute.xlu0 %1231 }
 0x292   : > { %v1366_v43 = vmul.f32 %v1237_v41, %v1142_v38  ;;  %v1365_v44 = vmul.f32 %v1232_v42, %v1141_v39  ;;  %2878 = vmatprep.mubr.bf16.mxu0 %v1393_v40  ;;  %v1159_v38 = vld [vmem:[#allocation2 + $0xc0] sm:$0xff] }
 0x294   : > { %v1394_v47 = vpack.c.bf16 %v1366_v43, %v1365_v44  ;;  %v1162_v44 = vld [vmem:[#allocation2 + $0xd8] sm:$0xff] }
 0x295   : > { %v1247_v48 = vpop.permute.xlu1 %1246  ;;  %v1242_v49 = vpop.permute.xlu0 %1241 }
 0x296   : > { %v1368_v50 = vmul.f32 %v1247_v48, %v1144_v45  ;;  %v1367_v51 = vmul.f32 %v1242_v49, %v1143_v46  ;;  %v1161_v45 = vld [vmem:[#allocation2 + $0xd0] sm:$0xff] }
 0x297   : > { %2879 = vmatmul.mubr.bf16.gmra.mrb[4].mxu0 %v1394_v47 }
 0x298   : > { %v1395_v54 = vpack.c.bf16 %v1368_v50, %v1367_v51  ;;  %v1164_v51 = vld [vmem:[#allocation2 + $0xe8] sm:$0xff] }
 0x299   : > { %v1257_v55 = vpop.permute.xlu1 %1256  ;;  %v1252_v56 = vpop.permute.xlu0 %1251 }
 0x29a   : > { %v1370_v57 = vmul.f32 %v1257_v55, %v1146_v52  ;;  %v1369_v58 = vmul.f32 %v1252_v56, %v1145_v53  ;;  %2882 = vmatprep.mubr.bf16.mxu0 %v1395_v54  ;;  %v1163_v52 = vld [vmem:[#allocation2 + $0xe0] sm:$0xff] }
 0x29c   : > { %v1396_v61 = vpack.c.bf16 %v1370_v57, %v1369_v58  ;;  %v1166_v58 = vld [vmem:[#allocation2 + $0xf8] sm:$0xff] }
 0x29d   : > { %v1267_v62 = vpop.permute.xlu1 %1266  ;;  %v1262_v63 = vpop.permute.xlu0 %1261 }
 0x29e   : > { %v1372_v0 = vmul.f32 %v1267_v62, %v1148_v59  ;;  %v1371_v1 = vmul.f32 %v1262_v63, %v1147_v60  ;;  %v1165_v59 = vld [vmem:[#allocation2 + $0xf0] sm:$0xff] }
 0x29f   : > { %2883 = vmatmul.mubr.bf16.gmra.mrb[8].mxu0 %v1396_v61 }
 0x2a0   : > { %v1397_v4 = vpack.c.bf16 %v1372_v0, %v1371_v1 }
 0x2a1   : > { %v1277_v5 = vpop.permute.xlu1 %1276  ;;  %v1272_v6 = vpop.permute.xlu0 %1271 }
 0x2a2   : > { %v1374_v7 = vmul.f32 %v1277_v5, %v1150_v2  ;;  %v1373_v8 = vmul.f32 %v1272_v6, %v1149_v3  ;;  %2886 = vmatprep.mubr.bf16.mxu0 %v1397_v4 }
 0x2a4   : > { %v1398_v11 = vpack.c.bf16 %v1374_v7, %v1373_v8 }
 0x2a5   : > { %v1287_v12 = vpop.permute.xlu1 %1286  ;;  %v1282_v13 = vpop.permute.xlu0 %1281 }
 0x2a6   : > { %v1376_v14 = vmul.f32 %v1287_v12, %v1152_v9  ;;  %v1375_v15 = vmul.f32 %v1282_v13, %v1151_v10 }
 0x2a7   : > { %2887 = vmatmul.mubr.bf16.gmra.mrb[12].mxu0 %v1398_v11 }
 0x2a8   : > { %v1399_v18 = vpack.c.bf16 %v1376_v14, %v1375_v15 }
 0x2a9   : > { %v1297_v19 = vpop.permute.xlu1 %1296  ;;  %v1292_v20 = vpop.permute.xlu0 %1291 }
 0x2aa   : > { %v1378_v21 = vmul.f32 %v1297_v19, %v1154_v16  ;;  %v1377_v22 = vmul.f32 %v1292_v20, %v1153_v17  ;;  %2890 = vmatprep.mubr.bf16.mxu0 %v1399_v18 }
 0x2ac   : > { %v1400_v25 = vpack.c.bf16 %v1378_v21, %v1377_v22 }
 0x2ad   : > { %v1307_v26 = vpop.permute.xlu1 %1306  ;;  %v1302_v27 = vpop.permute.xlu0 %1301 }
 0x2ae   : > { %v1380_v28 = vmul.f32 %v1307_v26, %v1156_v23  ;;  %v1379_v29 = vmul.f32 %v1302_v27, %v1155_v24 }
 0x2af   : > { %2891 = vmatmul.mubr.bf16.gmra.mrb[16].mxu0 %v1400_v25 }
 0x2b0   : > { %v1401_v32 = vpack.c.bf16 %v1380_v28, %v1379_v29 }
 0x2b1   : > { %v1317_v33 = vpop.permute.xlu1 %1316  ;;  %v1312_v34 = vpop.permute.xlu0 %1311 }
 0x2b2   : > { %v1382_v35 = vmul.f32 %v1317_v33, %v1158_v30  ;;  %v1381_v36 = vmul.f32 %v1312_v34, %v1157_v31  ;;  %2894 = vmatprep.mubr.bf16.mxu0 %v1401_v32 }
 0x2b4   : > { %v1402_v39 = vpack.c.bf16 %v1382_v35, %v1381_v36  ;;  %v3913_v35 = vld [vmem:[%s4112_s20] ss:$0 sm:$0xff] }
 0x2b5   : > { %v1327_v40 = vpop.permute.xlu1 %1326  ;;  %v1322_v41 = vpop.permute.xlu0 %1321 }
 0x2b6   : > { %v1384_v42 = vmul.f32 %v1327_v40, %v1160_v37  ;;  %v1383_v43 = vmul.f32 %v1322_v41, %v1159_v38 }
 0x2b7   : > { %2895 = vmatmul.mubr.bf16.gmra.mrb[20].mxu0 %v1402_v39 }
 0x2b8   : > { %v1403_v46 = vpack.c.bf16 %v1384_v42, %v1383_v43 }
 0x2b9   : > { %v1337_v47 = vpop.permute.xlu1 %1336  ;;  %v1332_v48 = vpop.permute.xlu0 %1331 }
 0x2ba   : > { %v1386_v49 = vmul.f32 %v1337_v47, %v1162_v44  ;;  %v1385_v50 = vmul.f32 %v1332_v48, %v1161_v45  ;;  %2898 = vmatprep.mubr.bf16.mxu0 %v1403_v46 }
 0x2bc   : > { %v1404_v53 = vpack.c.bf16 %v1386_v49, %v1385_v50 }
 0x2bd   : > { %v1347_v54 = vpop.permute.xlu1 %1346  ;;  %v1342_v55 = vpop.permute.xlu0 %1341 }
 0x2be   : > { %v1388_v56 = vmul.f32 %v1347_v54, %v1164_v51  ;;  %v1387_v57 = vmul.f32 %v1342_v55, %v1163_v52 }
 0x2bf   : > { %2899 = vmatmul.mubr.bf16.gmra.mrb[24].mxu0 %v1404_v53 }
 0x2c0   : > { %v1405_v60 = vpack.c.bf16 %v1388_v56, %v1387_v57 }
 0x2c1   : > { %v1357_v61 = vpop.permute.xlu1 %1356  ;;  %v1352_v62 = vpop.permute.xlu0 %1351 }
 0x2c2   : > { %v1390_v63 = vmul.f32 %v1357_v61, %v1166_v58  ;;  %v1389_v0 = vmul.f32 %v1352_v62, %v1165_v59  ;;  %2902 = vmatprep.mubr.bf16.mxu0 %v1405_v60 }
 0x2c4   : > { %v1406_v1 = vpack.c.bf16 %v1390_v63, %v1389_v0 }
 0x2c7   : > { %2903 = vmatmul.mubr.bf16.gmra.mrb[28].mxu0 %v1406_v1 }
 0x2fa   : > { %v2828_v2 = vpop.f32.mrb[0].mxu1 }
 0x2fb   : > { %v1649_v3 = vpop.f32.mrb[1].mxu1 }
 0x2fc   : > { %v2829_v4 = vpop.f32.mrb[2].mxu1 }
 0x2fd   : > { %v1652_v5 = vpop.f32.mrb[3].mxu1 }
 0x302   : > { %v2832_v6 = vpop.f32.mrb[4].mxu1 }
 0x303   : > { %v1665_v7 = vpop.f32.mrb[5].mxu1 }
 0x304   : > { %v2833_v8 = vpop.f32.mrb[6].mxu1 }
 0x305   : > { %v1668_v9 = vpop.f32.mrb[7].mxu1 }
 0x30a   : > { %v3862_v10 = vpop.f32.mrb[8].mxu1 }
 0x30b   : > { %v3864_v11 = vpop.f32.mrb[9].mxu1 }
 0x30c   : > { %v3866_v12 = vpop.f32.mrb[10].mxu1 }
 0x30d   : > { %v3868_v13 = vpop.f32.mrb[11].mxu1 }
 0x312   : > { %v3870_v14 = vpop.f32.mrb[12].mxu1 }
 0x313   : > { %v3872_v15 = vpop.f32.mrb[13].mxu1 }
 0x314   : > { %v3874_v16 = vpop.f32.mrb[14].mxu1 }
 0x315   : > { %v3876_v17 = vpop.f32.mrb[15].mxu1 }
 0x31a   : > { %v3878_v18 = vpop.f32.mrb[16].mxu1 }
 0x31b   : > { %v3880_v19 = vpop.f32.mrb[17].mxu1 }
 0x31c   : > { %v3882_v20 = vpop.f32.mrb[18].mxu1 }
 0x31d   : > { %v3884_v21 = vpop.f32.mrb[19].mxu1 }
 0x322   : > { %v3886_v22 = vpop.f32.mrb[20].mxu1 }
 0x323   : > { %v3888_v23 = vpop.f32.mrb[21].mxu1 }
 0x324   : > { %v3890_v24 = vpop.f32.mrb[22].mxu1 }
 0x325   : > { %v3892_v25 = vpop.f32.mrb[23].mxu1 }
 0x32a   : > { %v3894_v26 = vpop.f32.mrb[24].mxu1 }
 0x32b   : > { %v3896_v27 = vpop.f32.mrb[25].mxu1 }
 0x32c   : > { %v3898_v28 = vpop.f32.mrb[26].mxu1 }
 0x32d   : > { %v3900_v29 = vpop.f32.mrb[27].mxu1 }
 0x332   : > { %v3902_v30 = vpop.f32.mrb[28].mxu1 }
 0x333   : > { %v3904_v31 = vpop.f32.mrb[29].mxu1 }
 0x334   : > { %v3906_v32 = vpop.f32.mrb[30].mxu1 }
 0x335   : > { %v3908_v33 = vpop.f32.mrb[31].mxu1 }
 0x362   : > { %v2876_v34 = vpop.f32.mrb[0].mxu0 }
 0x363   : > { %v1867_v36 = vadd.f32 %v2876_v34, %v2828_v2  ;;  %v1858_v37 = vpop.f32.mrb[1].mxu0 }
 0x364   : > { %v1859_v38 = vadd.f32 %v1858_v37, %v1649_v3  ;;  %v2877_v39 = vpop.f32.mrb[2].mxu0 }
 0x365   : > { %v1994_v40 = vadd.f32 %v3913_v35, %v1867_v36  ;;  %v1870_v41 = vadd.f32 %v2877_v39, %v2829_v4  ;;  %v1861_v42 = vpop.f32.mrb[3].mxu0 }
 0x366   : > { %v1992_v43 = vadd.f32 %v3913_v35, %v1859_v38  ;;  %v1862_v44 = vadd.f32 %v1861_v42, %v1652_v5 }
 0x367   : > { %v1995_v45 = vadd.f32 %v3913_v35, %v1870_v41  ;;  %v2026_v47 = vmax.f32 %v1994_v40, 0.0 }
 0x368   : > { %v1993_v46 = vadd.f32 %v3913_v35, %v1862_v44  ;;  %v2024_v49 = vmax.f32 %v1992_v43, 0.0 }
 0x369   : > { %v2027_v48 = vmax.f32 %v1995_v45, 0.0 }
 0x36a   : > { %v2025_v50 = vmax.f32 %v1993_v46, 0.0  ;;  %v2880_v51 = vpop.f32.mrb[4].mxu0 }
 0x36b   : > { %v2563_v52 = vpack.c.bf16 %v2027_v48, %v2026_v47  ;;  %v1883_v53 = vadd.f32 %v2880_v51, %v2832_v6  ;;  %v1874_v54 = vpop.f32.mrb[5].mxu0 }
 0x36c   : > { %v2558_v55 = vpack.c.bf16 %v2025_v50, %v2024_v49  ;;  %v1875_v56 = vadd.f32 %v1874_v54, %v1665_v7  ;;  %v2881_v57 = vpop.f32.mrb[6].mxu0 }
 0x36d   : > { %2635 = vst [vmem:[%s3760_s14 + $0x8] sm:$0xff] %v2563_v52   ;;  %v1998_v58 = vadd.f32 %v3913_v35, %v1883_v53  ;;  %v1886_v59 = vadd.f32 %v2881_v57, %v2833_v8  ;;  %v1877_v60 = vpop.f32.mrb[7].mxu0 }
 0x36e   : > { %2559 = vst [vmem:[%s3760_s14] sm:$0xff] %v2558_v55   ;;  %v1996_v61 = vadd.f32 %v3913_v35, %v1875_v56  ;;  %v1878_v62 = vadd.f32 %v1877_v60, %v1668_v9 }
 0x36f   : > { %v1999_v63 = vadd.f32 %v3913_v35, %v1886_v59  ;;  %v2030_v1 = vmax.f32 %v1998_v58, 0.0 }
 0x370   : > { %v1997_v0 = vadd.f32 %v3913_v35, %v1878_v62  ;;  %v2028_v3 = vmax.f32 %v1996_v61, 0.0 }
 0x371   : > { %v2031_v2 = vmax.f32 %v1999_v63, 0.0 }
 0x372   : > { %v2029_v4 = vmax.f32 %v1997_v0, 0.0  ;;  %v2884_v5 = vpop.f32.mrb[8].mxu0 }
 0x373   : > { %v2573_v6 = vpack.c.bf16 %v2031_v2, %v2030_v1  ;;  %v1899_v7 = vadd.f32 %v2884_v5, %v3862_v10  ;;  %v1890_v8 = vpop.f32.mrb[9].mxu0 }
 0x374   : > { %v2568_v34 = vpack.c.bf16 %v2029_v4, %v2028_v3  ;;  %v1891_v36 = vadd.f32 %v1890_v8, %v3864_v11  ;;  %v2885_v37 = vpop.f32.mrb[10].mxu0 }
 0x375   : > { %2637 = vst [vmem:[%s3760_s14 + $0x18] sm:$0xff] %v2573_v6   ;;  %v2002_v9 = vadd.f32 %v3913_v35, %v1899_v7  ;;  %v1902_v38 = vadd.f32 %v2885_v37, %v3866_v12  ;;  %v1893_v39 = vpop.f32.mrb[11].mxu0 }
 0x376   : > { %2636 = vst [vmem:[%s3760_s14 + $0x10] sm:$0xff] %v2568_v34   ;;  %v2000_v40 = vadd.f32 %v3913_v35, %v1891_v36  ;;  %v1894_v41 = vadd.f32 %v1893_v39, %v3868_v13 }
 0x377   : > { %v2003_v42 = vadd.f32 %v3913_v35, %v1902_v38  ;;  %v2034_v43 = vmax.f32 %v2002_v9, 0.0 }
 0x378   : > { %v2001_v10 = vadd.f32 %v3913_v35, %v1894_v41  ;;  %v2032_v44 = vmax.f32 %v2000_v40, 0.0 }
 0x379   : > { %v2035_v11 = vmax.f32 %v2003_v42, 0.0 }
 0x37a   : > { %v2033_v45 = vmax.f32 %v2001_v10, 0.0  ;;  %v2888_v46 = vpop.f32.mrb[12].mxu0 }
 0x37b   : > { %v2583_v47 = vpack.c.bf16 %v2035_v11, %v2034_v43  ;;  %v1915_v12 = vadd.f32 %v2888_v46, %v3870_v14  ;;  %v1906_v48 = vpop.f32.mrb[13].mxu0 }
 0x37c   : > { %v2578_v49 = vpack.c.bf16 %v2033_v45, %v2032_v44  ;;  %v1907_v50 = vadd.f32 %v1906_v48, %v3872_v15  ;;  %v2889_v51 = vpop.f32.mrb[14].mxu0 }
 0x37d   : > { %2639 = vst [vmem:[%s3760_s14 + $0x28] sm:$0xff] %v2583_v47   ;;  %v2006_v13 = vadd.f32 %v3913_v35, %v1915_v12  ;;  %v1918_v52 = vadd.f32 %v2889_v51, %v3874_v16  ;;  %v1909_v53 = vpop.f32.mrb[15].mxu0 }
 0x37e   : > { %2638 = vst [vmem:[%s3760_s14 + $0x20] sm:$0xff] %v2578_v49   ;;  %v2004_v54 = vadd.f32 %v3913_v35, %v1907_v50  ;;  %v1910_v55 = vadd.f32 %v1909_v53, %v3876_v17 }
 0x37f   : > { %v2007_v56 = vadd.f32 %v3913_v35, %v1918_v52  ;;  %v2038_v57 = vmax.f32 %v2006_v13, 0.0 }
 0x380   : > { %v2005_v14 = vadd.f32 %v3913_v35, %v1910_v55  ;;  %v2036_v58 = vmax.f32 %v2004_v54, 0.0 }
 0x381   : > { %v2039_v15 = vmax.f32 %v2007_v56, 0.0 }
 0x382   : > { %v2037_v59 = vmax.f32 %v2005_v14, 0.0  ;;  %v2892_v60 = vpop.f32.mrb[16].mxu0 }
 0x383   : > { %v2593_v61 = vpack.c.bf16 %v2039_v15, %v2038_v57  ;;  %v1931_v16 = vadd.f32 %v2892_v60, %v3878_v18  ;;  %v1922_v62 = vpop.f32.mrb[17].mxu0 }
 0x384   : > { %v2588_v63 = vpack.c.bf16 %v2037_v59, %v2036_v58  ;;  %v1923_v0 = vadd.f32 %v1922_v62, %v3880_v19  ;;  %v2893_v1 = vpop.f32.mrb[18].mxu0 }
 0x385   : > { %2641 = vst [vmem:[%s3760_s14 + $0x38] sm:$0xff] %v2593_v61   ;;  %v2010_v17 = vadd.f32 %v3913_v35, %v1931_v16  ;;  %v1934_v2 = vadd.f32 %v2893_v1, %v3882_v20  ;;  %v1925_v3 = vpop.f32.mrb[19].mxu0 }
 0x386   : > { %2640 = vst [vmem:[%s3760_s14 + $0x30] sm:$0xff] %v2588_v63   ;;  %v2008_v4 = vadd.f32 %v3913_v35, %v1923_v0  ;;  %v1926_v5 = vadd.f32 %v1925_v3, %v3884_v21 }
 0x387   : > { %v2011_v6 = vadd.f32 %v3913_v35, %v1934_v2  ;;  %v2042_v7 = vmax.f32 %v2010_v17, 0.0 }
 0x388   : > { %v2009_v18 = vadd.f32 %v3913_v35, %v1926_v5  ;;  %v2040_v8 = vmax.f32 %v2008_v4, 0.0 }
 0x389   : > { %v2043_v19 = vmax.f32 %v2011_v6, 0.0 }
 0x38a   : > { %v2041_v34 = vmax.f32 %v2009_v18, 0.0  ;;  %v2896_v36 = vpop.f32.mrb[20].mxu0 }
 0x38b   : > { %v2603_v37 = vpack.c.bf16 %v2043_v19, %v2042_v7  ;;  %v1947_v20 = vadd.f32 %v2896_v36, %v3886_v22  ;;  %v1938_v9 = vpop.f32.mrb[21].mxu0 }
 0x38c   : > { %v2598_v38 = vpack.c.bf16 %v2041_v34, %v2040_v8  ;;  %v1939_v39 = vadd.f32 %v1938_v9, %v3888_v23  ;;  %v2897_v40 = vpop.f32.mrb[22].mxu0 }
 0x38d   : > { %2643 = vst [vmem:[%s3760_s14 + $0x48] sm:$0xff] %v2603_v37   ;;  %v2014_v21 = vadd.f32 %v3913_v35, %v1947_v20  ;;  %v1950_v41 = vadd.f32 %v2897_v40, %v3890_v24  ;;  %v1941_v42 = vpop.f32.mrb[23].mxu0 }
 0x38e   : > { %2642 = vst [vmem:[%s3760_s14 + $0x40] sm:$0xff] %v2598_v38   ;;  %v2012_v10 = vadd.f32 %v3913_v35, %v1939_v39  ;;  %v1942_v43 = vadd.f32 %v1941_v42, %v3892_v25 }
 0x38f   : > { %v2015_v11 = vadd.f32 %v3913_v35, %v1950_v41  ;;  %v2046_v44 = vmax.f32 %v2014_v21, 0.0 }
 0x390   : > { %v2013_v22 = vadd.f32 %v3913_v35, %v1942_v43  ;;  %v2044_v45 = vmax.f32 %v2012_v10, 0.0 }
 0x391   : > { %v2047_v23 = vmax.f32 %v2015_v11, 0.0 }
 0x392   : > { %v2045_v46 = vmax.f32 %v2013_v22, 0.0  ;;  %v2900_v47 = vpop.f32.mrb[24].mxu0 }
 0x393   : > { %v2613_v12 = vpack.c.bf16 %v2047_v23, %v2046_v44  ;;  %v1963_v24 = vadd.f32 %v2900_v47, %v3894_v26  ;;  %v1954_v48 = vpop.f32.mrb[25].mxu0 }
 0x394   : > { %v2608_v49 = vpack.c.bf16 %v2045_v46, %v2044_v45  ;;  %v1955_v50 = vadd.f32 %v1954_v48, %v3896_v27  ;;  %v2901_v51 = vpop.f32.mrb[26].mxu0 }
 0x395   : > { %2645 = vst [vmem:[%s3760_s14 + $0x58] sm:$0xff] %v2613_v12   ;;  %v2018_v25 = vadd.f32 %v3913_v35, %v1963_v24  ;;  %v1966_v13 = vadd.f32 %v2901_v51, %v3898_v28  ;;  %v1957_v52 = vpop.f32.mrb[27].mxu0 }
 0x396   : > { %2644 = vst [vmem:[%s3760_s14 + $0x50] sm:$0xff] %v2608_v49   ;;  %v2016_v53 = vadd.f32 %v3913_v35, %v1955_v50  ;;  %v1958_v54 = vadd.f32 %v1957_v52, %v3900_v29 }
 0x397   : > { %v2019_v55 = vadd.f32 %v3913_v35, %v1966_v13  ;;  %v2050_v56 = vmax.f32 %v2018_v25, 0.0 }
 0x398   : > { %v2017_v26 = vadd.f32 %v3913_v35, %v1958_v54  ;;  %v2048_v14 = vmax.f32 %v2016_v53, 0.0 }
 0x399   : > { %v2051_v27 = vmax.f32 %v2019_v55, 0.0 }
 0x39a   : > { %v2049_v57 = vmax.f32 %v2017_v26, 0.0  ;;  %v2904_v15 = vpop.f32.mrb[28].mxu0 }
 0x39b   : > { %v2623_v58 = vpack.c.bf16 %v2051_v27, %v2050_v56  ;;  %v1979_v28 = vadd.f32 %v2904_v15, %v3902_v30  ;;  %v1970_v59 = vpop.f32.mrb[29].mxu0 }
 0x39c   : > { %v2618_v60 = vpack.c.bf16 %v2049_v57, %v2048_v14  ;;  %v1971_v61 = vadd.f32 %v1970_v59, %v3904_v31  ;;  %v2905_v16 = vpop.f32.mrb[30].mxu0 }
 0x39d   : > { %2647 = vst [vmem:[%s3760_s14 + $0x68] sm:$0xff] %v2623_v58   ;;  %v2022_v29 = vadd.f32 %v3913_v35, %v1979_v28  ;;  %v1982_v62 = vadd.f32 %v2905_v16, %v3906_v32  ;;  %v1973_v63 = vpop.f32.mrb[31].mxu0 }
 0x39e   : > { %2646 = vst [vmem:[%s3760_s14 + $0x60] sm:$0xff] %v2618_v60   ;;  %v2020_v0 = vadd.f32 %v3913_v35, %v1971_v61  ;;  %v1974_v1 = vadd.f32 %v1973_v63, %v3908_v33 }
 0x39f   : > { %v2023_v30 = vadd.f32 %v3913_v35, %v1982_v62  ;;  %v2054_v2 = vmax.f32 %v2022_v29, 0.0 }
 0x3a0   : > { %v2021_v17 = vadd.f32 %v3913_v35, %v1974_v1  ;;  %v2052_v3 = vmax.f32 %v2020_v0, 0.0 }
 0x3a1   : > { %v2055_v31 = vmax.f32 %v2023_v30, 0.0 }
 0x3a2   : > { %v2053_v4 = vmax.f32 %v2021_v17, 0.0 }
 0x3a3   : > { %v2633_v5 = vpack.c.bf16 %v2055_v31, %v2054_v2 }
 0x3a4   : > { %v2628_v6 = vpack.c.bf16 %v2053_v4, %v2052_v3 }
 0x3a5   : > { %2649 = vst [vmem:[%s3760_s14 + $0x78] sm:$0xff] %v2633_v5  }
 0x3a6   : > { %2648 = vst [vmem:[%s3760_s14 + $0x70] sm:$0xff] %v2628_v6  }
 0x3a7 PF: > { %s4113_s6 = sld [smem:[#allocation22_spill]]  ;;  %s2554_s30 = sshll.u32 %s3416_s24, 11 }
 0x3a8   : > { %s4114_s7 = sld [smem:[#allocation31_spill]]  ;;  %s2230_s9 = sshll.u32 %s3760_s14, 4  ;;  %s3994_s9 = int_to_ptr.vmem [resolvable:$true] %s2230_s9 }
 0x3a9   : > { %s3998_s0 = scalar_lea.sflag [#allocation8], %s464_s8  ;;  %s3300_s25 = scalar_lea.vmem %s3994_s9, 2048 }
 0x3aa   : > { %p3301_p5 = scmp.ne.s32.totalorder %s3994_s9, %s3300_s25  ;;  %s3442_s24 = smov [#allocation12]  }
 0x3ab   : > { %s3304_s19 = sshll.u32 %s3442_s24, 4  ;;  %s3305_s19 = int_to_ptr.vmem [resolvable:$false] %s3304_s19 }
 0x3ac   : > { %s3306_s12 = scalar_lea.vmem %s3305_s19, 4096  ;;  %p3307_p10 = scmp.lt.s32.totalorder %s3994_s9, %s3305_s19 }
 0x3ad   : > { %p4115_p7 = scmp.ne.s32.totalorder %s4113_s6, 0  ;;  %p3308_p3 = scmp.lt.s32.totalorder %s3306_s12, %s3300_s25 }
 0x3ae   : > { %s3991_s17 = scalar_lea.hbm %s4114_s7, %s2554_s30 }
 0x3af   : > { %p3302_p2 = pnand %p3301_p5, %p4115_p7  ;;  %p3309_p4 = por %p3308_p3, %p3307_p10 }
 0x3b1   : > { %p3303_p6 = pneg %p3302_p2 }
 0x3b3   : > { %p3310_p8 = pnand %p3309_p4, %p3303_p6 }
 0x3b5   : > { %3313 = shalt.err (!%p3310_p8)
}
 0x3b6   : > { %s3314_s8 = scalar_lea.hbm %s3991_s17, 2048  ;;  %s3318_s1 = scalar_lea.hbm %s4114_s7, 4096 }
 0x3b7   : > { %p3315_p11 = scmp.ne.s32.totalorder %s3991_s17, %s3314_s8  ;;  %p3319_p0 = scmp.lt.u32.totalorder %s3991_s17, %s4114_s7 }
 0x3b8   : > { %p3320_p13 = scmp.lt.u32.totalorder %s3318_s1, %s3314_s8  ;;  %p3322_p5 = scmp.lt.u32.totalorder %s3314_s8, %s3991_s17 }
 0x3b9   : > { %p3316_p9 = pnand %p3315_p11, %p4115_p7 }
 0x3ba   : > { %p3321_p1 = por %p3320_p13, %p3319_p0 }
 0x3bb   : > { %p3317_p12 = pneg %p3316_p9 }
 0x3bc   : > { %p3323_p2 = por %p3322_p5, %p3321_p1 }
 0x3be   : > { %p3324_p6 = pnand %p3323_p2, %p3317_p12 }
 0x3c0   : > { %3327 = shalt.err (!%p3324_p6)
}
 0x3c1   : > { %s3443_s10 = smov 64   ;;  %s3444_s23 = smov 4  }
 0x3c2   : > { %2966 = dma.vmem_to_hbm [thread:$0]  (%p4115_p7), %s3994_s9, 2048, %s3991_s17, %s3998_s0, %s3443_s10, %s3443_s10, %s3444_s23  }
 0x3c3 PF: > { %s4116_s28 = sld [smem:[#allocation19_spill]]  ;;  %s4117_s20 = sld [smem:[#allocation23_spill]] }
 0x3c4   : > { %p2990_p10 = scmp.ge.s32.totalorder %s3428_s27, 2 }
 0x3c9   : > { %s2245_s30 = sand.u32 1, %s4116_s28   ;;  %p4118_p3 = scmp.ne.s32.totalorder %s4117_s20, 0 }
 0x3ca   : > { %s2246_s15 = scalar_lea.sflag [#allocation8], %s2245_s30 }
 0x3cb   : > { %p2982_p4 = pnand %p2990_p10, %p4118_p3 }
 0x3cd   : > { %3383 = dma.done.wait (!%p2982_p4), %s2246_s15, 2048  }
 0x3ce   : > { %3385 = vsyncadd (!%p2982_p4), %s2246_s15, 4294965248  ;;  %s36_s27 = sadd.s32 1, %s3428_s27   ;;  %s4119_s16 = sld [smem:[#allocation20_spill]] }
 0x3cf   : > { %p33_p8 = scmp.ge.s32.totalorder %s36_s27, 6   ;;  %s4120_s19 = sld [smem:[#allocation26_spill]] }
 0x3d0   : > { %s4121_s23 = sld [smem:[#allocation21_spill]]  ;;  %s4122_s25 = sld [smem:[#allocation24_spill]] }
 0x3d1   : > { %s4123_s6 = sld [smem:[#allocation25_spill]]  ;;  %s4124_s1 = smov %s3392_s18 }
 0x3d2   : > { %s4126_s20 = smov %s3404_s21  ;;  %s4127_s21 = smov %s3408_s22 }
 0x3d3   : > { %s4128_s22 = smov %s3687_s29  ;;  %s4129_s24 = smov %s3424_s26 }
 0x3d4   : > { %s4125_s18 = smov %s4119_s16  ;;  %35 = sbr.rel (!%p33_p8) target bundleno = 38 (0x26), region = 122 }
 0x3d7   : > { %s4130_s26 = smov %s4123_s6 }
 0x3db   :  { %2251 = vsyncpa [#allocation7], 1 }
 0x3dc   :  { %2253 = vsyncpa [#allocation7 + $0x1], 1 }
 0x3dd   :  { %2254 = vsyncpa [#allocation10], 1 }
 0x3de   :  { %2255 = vsyncpa [#allocation8], 1 }
 0x3df   :  { %2257 = vsyncpa [#allocation8 + $0x1], 1 }

</bundles_post_ra>
